<compile_context>
chip_gen: v6e
topology: v6e:2x2x1
jax: 0.10.0
libtpu: 0.0.40
codegen_flags: <defaults>
</compile_context>

<pallas_src>
import math
import inspect
import functools

import jax
import jax.numpy as jnp
from jax import lax
from jax.experimental import pallas as pl
from jax.experimental.pallas import tpu as pltpu


def _layer_norm(x, gamma, beta, eps=1e-5):
    mean = jnp.mean(x, axis=-1, keepdims=True)
    var = jnp.mean((x - mean) ** 2, axis=-1, keepdims=True)
    return (x - mean) * lax.rsqrt(var + eps) * gamma + beta


def _gelu_exact(x):
    # matches torch.nn.GELU() (erf formulation)
    return 0.5 * x * (1.0 + lax.erf(x * (1.0 / math.sqrt(2.0))))


def transformer_block_kernel(
    xq_ref, xkv_ref,
    wq_ref, wkv_ref, wo_ref, bo_ref,
    g1_ref, b1_ref, g2_ref, b2_ref,
    wff1_ref, bff1_ref, wff2_ref, bff2_ref,
    o_ref,
    k_cache, v_cache,
    *, num_heads, head_group, ff_chunk,
):
    f32 = jnp.float32
    cdt = jnp.bfloat16                 # MXU operand dtype (f32 accumulation)

    xq = xq_ref[0].astype(f32)         # (TQ, E) query tile, f32 for residual
    TQ, E = xq.shape
    H = num_heads
    Dh = E // H
    G = head_group
    Gw = G * Dh

    # ---- per-batch K/V cache: full-sequence K/V projection runs once per
    # batch element (qi == 0), not once per query tile ------------------------
    @pl.when(pl.program_id(1) == 0)
    def _():
        xkv = xkv_ref[0]                                               # (S, E) bf16
        kv = jnp.dot(xkv, wkv_ref[...], preferred_element_type=f32)    # (S, 2E)
        k_cache[...] = kv[:, :E].astype(cdt)
        v_cache[...] = kv[:, E:].astype(cdt)

    # ---- Q projection for this query tile (1/sqrt(Dh) folded into Wq) -------
    q = jnp.dot(xq.astype(cdt), wq_ref[...], preferred_element_type=f32).astype(cdt)
    k = k_cache[...]                                                   # (S, E) bf16
    v = v_cache[...]

    # ---- attention: heads in lane-dense groups, folded straight into Wo -----
    # TODO(synk): attention mask support (mask=None in the reference test path)
    # TODO(synk): switch to lax.fori_loop over groups for very long S so the
    # scheduler cannot keep several (TQ, S) f32 score slabs live at once.
    msa = jnp.zeros((TQ, E), f32)
    for g in range(H // G):                    # static unroll; n_groups is small
        base = g * Gw
        outs = []
        for hh in range(G):
            lo = base + hh * Dh
            qh = q[:, lo:lo + Dh]
            kh = k[:, lo:lo + Dh]
            vh = v[:, lo:lo + Dh]
            # scores: contract on Dh — no materialized transpose of K
            s = lax.dot_general(qh, kh, (((1,), (1,)), ((), ())),
                                preferred_element_type=f32)            # (TQ, S)
            s = s - jnp.max(s, axis=-1, keepdims=True)
            p = jnp.exp(s)
            p = p * pl.reciprocal(jnp.sum(p, axis=-1, keepdims=True), approx=True)
            outs.append(jnp.dot(p.astype(cdt), vh, preferred_element_type=f32))
        grp = outs[0] if G == 1 else jnp.concatenate(outs, axis=-1)     # (TQ, Gw)
        msa = msa + jnp.dot(grp.astype(cdt), wo_ref[base:base + Gw, :],
                            preferred_element_type=f32)
    msa = msa + bo_ref[...]

    # ---- post-LN wiring ------------------------------------------------------
    msa_residual = xq + msa
    ln_1_out = _layer_norm(msa_residual, g1_ref[...], b1_ref[...])
    ln_1_c = ln_1_out.astype(cdt)

    # d_ff-chunked MLP: bounds the hidden intermediate to (TQ, ff_chunk).
    # TODO(synk): stream Wff1/Wff2 with a third ("arbitrary") grid axis for
    # ViT-Base-scale d_ff on v7x instead of keeping them fully VMEM-resident.
    d_ff = wff1_ref.shape[1]
    bff1 = bff1_ref[...]
    mlp = jnp.zeros((TQ, E), f32)
    for c in range(d_ff // ff_chunk):
        c0 = c * ff_chunk
        h1 = jnp.dot(ln_1_c, wff1_ref[:, c0:c0 + ff_chunk],
                     preferred_element_type=f32) + bff1[:, c0:c0 + ff_chunk]
        h1 = _gelu_exact(h1)
        mlp = mlp + jnp.dot(h1.astype(cdt), wff2_ref[c0:c0 + ff_chunk, :],
                            preferred_element_type=f32)
    mlp_out = mlp + bff2_ref[...]

    mlp_residual = ln_1_out + mlp_out
    o_ref[0] = _layer_norm(mlp_residual, g2_ref[...], b2_ref[...]).astype(o_ref.dtype)


def _head_group_size(num_heads, head_dim):
    """Group heads so each group's concat width is a full 128 lanes (ViT Dh=64
    -> pairs). Tiny / awkward head dims fall back to per-head accumulation."""
    if head_dim < 64 or head_dim >= 128 or (128 % head_dim) != 0:
        return 1
    g = min(num_heads, 128 // head_dim)
    while num_heads % g != 0:
        g -= 1
    return g


def _pick_ff_chunk(d_ff):
    for c in (1024, 512, 256, 128):
        if d_ff % c == 0:
            return c
    return d_ff


def _pick_q_tile(S, tq_max):
    """Query tile + padded sequence length. Never falls through to tiny tiles:
    either the whole sequence, a divisor >= 128, or pad the last tile."""
    if S <= tq_max:
        return S, S
    for tq in range(tq_max, 127, -8):          # multiples of 8, >= 128
        if S % tq == 0:
            return tq, S
    tq = min(tq_max, 256)
    return tq, ((S + tq - 1) // tq) * tq


def transformer_block(x, params, num_heads):
    B, S, E = x.shape
    assert E % num_heads == 0
    H = num_heads
    Dh = E // H
    d_ff = params["w_ff1"].shape[1]
    scale = 1.0 / math.sqrt(Dh)
    cdt = jnp.bfloat16

    # hardware query (fall back to conservative v7x numbers if unavailable)
    try:
        info = pltpu.get_tpu_info()
        vmem_cap = int(getattr(info, "vmem_capacity_bytes", 64 << 20))
    except Exception:
        vmem_cap = 64 << 20

    tq_max = 512 if vmem_cap >= (96 << 20) else 256     # v5e/v6e vs v7x
    TQ, S_pad = _pick_q_tile(S, tq_max)
    n_q = S_pad // TQ

    G = _head_group_size(H, Dh)
    ff_chunk = _pick_ff_chunk(d_ff)

    # bf16 matmul weights (f32 accumulation in-kernel); fold 1/sqrt(Dh) into Wq.
    wq = (params["wq"] * scale).astype(cdt)
    wkv = jnp.concatenate([params["wk"], params["wv"]], axis=1).astype(cdt)
    wo = params["wo"].astype(cdt)
    wff1 = params["w_ff1"].astype(cdt)
    wff2 = params["w_ff2"].astype(cdt)

    # K/V operand is only ever an MXU input: ship it as bf16; the query tile
    # stays f32 for the residual path. Pad only the query side for awkward S.
    x_kv = x.astype(cdt)
    x_q = x
    if S_pad != S:
        x_q = jnp.pad(x_q, ((0, 0), (0, S_pad - S), (0, 0)))

    # Constant blocks are fetched once; single-buffer them when supported so
    # resident weights cost ~half the VMEM (matters on v7x's 64 MiB VMEM).
    const_kwargs = {}
    try:
        if hasattr(pl, "Buffered") and \
                "pipeline_mode" in inspect.signature(pl.BlockSpec).parameters:
            const_kwargs["pipeline_mode"] = pl.Buffered(buffer_count=1)
    except (TypeError, ValueError):
        pass

    def const(shape):
        return pl.BlockSpec(shape, lambda b, qi: (0,) * len(shape), **const_kwargs)

    in_specs = [
        pl.BlockSpec((1, TQ, E), lambda b, qi: (b, qi, 0)),   # x: query tile (f32)
        pl.BlockSpec((1, S, E), lambda b, qi: (b, 0, 0)),     # x: full seq for K/V (bf16)
        const((E, E)), const((E, 2 * E)), const((E, E)), const((1, E)),      # Wq, Wkv, Wo, bo
        const((1, E)), const((1, E)), const((1, E)), const((1, E)),          # ln1/ln2 gamma,beta
        const((E, d_ff)), const((1, d_ff)), const((d_ff, E)), const((1, E)), # MLP
    ]

    # VMEM estimate: weights + I/O blocks + K/V cache + live intermediates.
    wbuf = 1 if "pipeline_mode" in const_kwargs else 2
    weight_bytes = wbuf * 2 * (4 * E * E + 2 * E * d_ff + 6 * E + d_ff)
    io_bytes = 2 * 4 * TQ * E + 2 * 2 * S * E + 2 * 4 * TQ * E
    cache_bytes = 2 * 2 * S * E
    inter_bytes = 4 * (2 * TQ * S + 6 * TQ * E + TQ * ff_chunk) + 2 * (2 * S * E + TQ * E)
    est = weight_bytes + io_bytes + cache_bytes + inter_bytes

    # B axis is megacore-parallel; qi must be "arbitrary" so the per-batch
    # K/V cache in scratch is legal across query tiles.
    # TODO(synk): when B < number of TensorCores (v7x), shard qi across cores
    # (dropping the K/V cache) so no core sits idle.
    cp_kwargs = dict(dimension_semantics=("parallel", "arbitrary"))
    default_limit = 32 << 20
    if est > (default_limit - (8 << 20)):
        cap = max(vmem_cap - (8 << 20), default_limit)   # never exceed physical VMEM
        cp_kwargs["vmem_limit_bytes"] = int(min(est + (8 << 20), cap))

    kernel = functools.partial(transformer_block_kernel, num_heads=H,
                               head_group=G, ff_chunk=ff_chunk)
    out = pl.pallas_call(
        kernel,
        out_shape=jax.ShapeDtypeStruct((B, S_pad, E), x.dtype),
        grid_spec=pltpu.PrefetchScalarGridSpec(
            num_scalar_prefetch=0,
            grid=(B, n_q),
            in_specs=in_specs,
            out_specs=pl.BlockSpec((1, TQ, E), lambda b, qi: (b, qi, 0)),
            scratch_shapes=[pltpu.VMEM((S, E), cdt),   # K cache (per batch elem)
                            pltpu.VMEM((S, E), cdt)],  # V cache
        ),
        compiler_params=pltpu.CompilerParams(**cp_kwargs),
    )(
        x_q, x_kv,
        wq, wkv, wo, params["bo"],
        params["ln1_g"], params["ln1_b"], params["ln2_g"], params["ln2_b"],
        wff1, params["b_ff1"], wff2, params["b_ff2"],
    )
    return out[:, :S, :] if S_pad != S else out


def reference_forward(x, params, num_heads):
    """Pure-JAX f32 reference of the same post-LN TransformerBlock."""
    B, S, E = x.shape
    Dh = E // num_heads
    scale = 1.0 / math.sqrt(Dh)

    q = x @ params["wq"]
    k = x @ params["wk"]
    v = x @ params["wv"]
    qh = q.reshape(B, S, num_heads, Dh).transpose(0, 2, 1, 3)
    kh = k.reshape(B, S, num_heads, Dh).transpose(0, 2, 1, 3)
    vh = v.reshape(B, S, num_heads, Dh).transpose(0, 2, 1, 3)
    s = jnp.einsum("bhqd,bhkd->bhqk", qh, kh) * scale
    p = jax.nn.softmax(s, axis=-1)
    attn = jnp.einsum("bhqk,bhkd->bhqd", p, vh).transpose(0, 2, 1, 3).reshape(B, S, E)
    msa_out = attn @ params["wo"] + params["bo"]

    msa_residual = x + msa_out
    ln1 = _layer_norm(msa_residual, params["ln1_g"], params["ln1_b"])
    h1 = _gelu_exact(ln1 @ params["w_ff1"] + params["b_ff1"])
    mlp_out = h1 @ params["w_ff2"] + params["b_ff2"]
    mlp_residual = ln1 + mlp_out
    return _layer_norm(mlp_residual, params["ln2_g"], params["ln2_b"])


def init_params(key, embed_dim, d_ff):
    ks = jax.random.split(key, 8)
    sd = 0.02
    return {
        "wq": sd * jax.random.normal(ks[0], (embed_dim, embed_dim), jnp.float32),
        "wk": sd * jax.random.normal(ks[1], (embed_dim, embed_dim), jnp.float32),
        "wv": sd * jax.random.normal(ks[2], (embed_dim, embed_dim), jnp.float32),
        "wo": sd * jax.random.normal(ks[3], (embed_dim, embed_dim), jnp.float32),
        "bo": jnp.zeros((1, embed_dim), jnp.float32),
        "ln1_g": jnp.ones((1, embed_dim), jnp.float32),
        "ln1_b": jnp.zeros((1, embed_dim), jnp.float32),
        "ln2_g": jnp.ones((1, embed_dim), jnp.float32),
        "ln2_b": jnp.zeros((1, embed_dim), jnp.float32),
        "w_ff1": sd * jax.random.normal(ks[4], (embed_dim, d_ff), jnp.float32),
        "b_ff1": sd * jax.random.normal(ks[5], (1, d_ff), jnp.float32),
        "w_ff2": sd * jax.random.normal(ks[6], (d_ff, embed_dim), jnp.float32),
        "b_ff2": sd * jax.random.normal(ks[7], (1, embed_dim), jnp.float32),
    }


if __name__ == "__main__":
    B, S, E = 2, 8, 32
    num_heads = 4
    d_ff = 64

    key = jax.random.PRNGKey(0)
    kx, kp = jax.random.split(key)
    x = jax.random.normal(kx, (B, S, E), jnp.float32)
    params = init_params(kp, E, d_ff)

    out = jax.block_until_ready(transformer_block(x, params, num_heads))
    ref = reference_forward(x, params, num_heads)

    assert out.shape == (B, S, E)
    # bf16 MXU operands + approximate softmax reciprocal loosen f32 tolerance
    err = float(jnp.max(jnp.abs(out - ref)))
    assert err < 5e-2, f"mismatch vs reference: max abs err {err}"

    print("KERNEL_OK")
</pallas_src>

<mosaic_0001>
module attributes {stable_mosaic.version = 11 : i64} {
  func.func @transformer_block_kernel(%arg0: i32, %arg1: i32, %arg2: memref<1x8x32xf32, #tpu.memory_space<vmem>>, %arg3: memref<1x8x32xbf16, #tpu.memory_space<vmem>>, %arg4: memref<32x32xbf16, #tpu.memory_space<vmem>>, %arg5: memref<32x64xbf16, #tpu.memory_space<vmem>>, %arg6: memref<32x32xbf16, #tpu.memory_space<vmem>>, %arg7: memref<1x32xf32, #tpu.memory_space<vmem>>, %arg8: memref<1x32xf32, #tpu.memory_space<vmem>>, %arg9: memref<1x32xf32, #tpu.memory_space<vmem>>, %arg10: memref<1x32xf32, #tpu.memory_space<vmem>>, %arg11: memref<1x32xf32, #tpu.memory_space<vmem>>, %arg12: memref<32x64xbf16, #tpu.memory_space<vmem>>, %arg13: memref<1x64xf32, #tpu.memory_space<vmem>>, %arg14: memref<64x32xbf16, #tpu.memory_space<vmem>>, %arg15: memref<1x32xf32, #tpu.memory_space<vmem>>, %arg16: memref<1x8x32xf32, #tpu.memory_space<vmem>>, %arg17: memref<8x32xbf16, #tpu.memory_space<vmem>>, %arg18: memref<8x32xbf16, #tpu.memory_space<vmem>>) attributes {dimension_semantics = [#tpu.dimension_semantics<parallel>, #tpu.dimension_semantics<arbitrary>], iteration_bounds = array<i64: 2, 1>, scalar_prefetch = 0 : i64, scratch_operands = 2 : i64, tpu.core_type = #tpu.core_type<tc>, window_params = [{transform_indices = @transform_0, window_bounds = array<i64: 1, 8, 32>}, {transform_indices = @transform_1, window_bounds = array<i64: 1, 8, 32>}, {pipeline_mode = #tpu.pipeline_mode<synchronous>, transform_indices = @transform_2, window_bounds = array<i64: 32, 32>}, {pipeline_mode = #tpu.pipeline_mode<synchronous>, transform_indices = @transform_3, window_bounds = array<i64: 32, 64>}, {pipeline_mode = #tpu.pipeline_mode<synchronous>, transform_indices = @transform_4, window_bounds = array<i64: 32, 32>}, {pipeline_mode = #tpu.pipeline_mode<synchronous>, transform_indices = @transform_5, window_bounds = array<i64: 1, 32>}, {pipeline_mode = #tpu.pipeline_mode<synchronous>, transform_indices = @transform_6, window_bounds = array<i64: 1, 32>}, {pipeline_mode = #tpu.pipeline_mode<synchronous>, transform_indices = @transform_7, window_bounds = array<i64: 1, 32>}, {pipeline_mode = #tpu.pipeline_mode<synchronous>, transform_indices = @transform_8, window_bounds = array<i64: 1, 32>}, {pipeline_mode = #tpu.pipeline_mode<synchronous>, transform_indices = @transform_9, window_bounds = array<i64: 1, 32>}, {pipeline_mode = #tpu.pipeline_mode<synchronous>, transform_indices = @transform_10, window_bounds = array<i64: 32, 64>}, {pipeline_mode = #tpu.pipeline_mode<synchronous>, transform_indices = @transform_11, window_bounds = array<i64: 1, 64>}, {pipeline_mode = #tpu.pipeline_mode<synchronous>, transform_indices = @transform_12, window_bounds = array<i64: 64, 32>}, {pipeline_mode = #tpu.pipeline_mode<synchronous>, transform_indices = @transform_13, window_bounds = array<i64: 1, 32>}, {transform_indices = @transform_14, window_bounds = array<i64: 1, 8, 32>}]} {
    %c0 = arith.constant 0 : index
    %c0_0 = arith.constant 0 : index
    %c0_1 = arith.constant 0 : index
    %0 = vector.load %arg2[%c0, %c0_0, %c0_1] : memref<1x8x32xf32, #tpu.memory_space<vmem>>, vector<1x8x32xf32>
    %1 = vector.shape_cast %0 : vector<1x8x32xf32> to vector<8x32xf32>
    %c0_i32 = arith.constant 0 : i32
    %2 = arith.cmpi eq, %arg1, %c0_i32 : i32
    %3 = arith.extui %2 : i1 to i32
    %c0_i32_2 = arith.constant 0 : i32
    %4 = arith.cmpi ne, %3, %c0_i32_2 : i32
    scf.if %4 {
      %c0_72 = arith.constant 0 : index
      %c0_73 = arith.constant 0 : index
      %c0_74 = arith.constant 0 : index
      %170 = vector.load %arg3[%c0_72, %c0_73, %c0_74] : memref<1x8x32xbf16, #tpu.memory_space<vmem>>, vector<1x8x32xbf16>
      %171 = vector.shape_cast %170 : vector<1x8x32xbf16> to vector<8x32xbf16>
      %c0_75 = arith.constant 0 : index
      %c0_76 = arith.constant 0 : index
      %172 = vector.load %arg5[%c0_75, %c0_76] : memref<32x64xbf16, #tpu.memory_space<vmem>>, vector<32x64xbf16>
      %cst_77 = arith.constant dense<0.000000e+00> : vector<8x64xf32>
      %173 = tpu.matmul %171, %172, %cst_77 {dimension_numbers = #tpu.dot_dimension_numbers<[1], [0], [0], [1], [0, 0, 1, 1], [], []>} : vector<8x32xbf16>, vector<32x64xbf16>, vector<8x64xf32> -> vector<8x64xf32>
      %174 = vector.extract_strided_slice %173 {offsets = [0, 0], sizes = [8, 32], strides = [1, 1]} : vector<8x64xf32> to vector<8x32xf32>
      %175 = arith.truncf %174 : vector<8x32xf32> to vector<8x32xbf16>
      %c0_78 = arith.constant 0 : index
      %c0_79 = arith.constant 0 : index
      %176 = vector.load %arg17[%c0_78, %c0_79] : memref<8x32xbf16, #tpu.memory_space<vmem>>, vector<8x32xbf16>
      tpu.vector_store %arg17[%c0_78, %c0_79], %175 {strides = array<i32>} : memref<8x32xbf16, #tpu.memory_space<vmem>>, vector<8x32xbf16>,
      %177 = vector.extract_strided_slice %173 {offsets = [0, 32], sizes = [8, 32], strides = [1, 1]} : vector<8x64xf32> to vector<8x32xf32>
      %178 = arith.truncf %177 : vector<8x32xf32> to vector<8x32xbf16>
      %c0_80 = arith.constant 0 : index
      %c0_81 = arith.constant 0 : index
      %179 = vector.load %arg18[%c0_80, %c0_81] : memref<8x32xbf16, #tpu.memory_space<vmem>>, vector<8x32xbf16>
      tpu.vector_store %arg18[%c0_80, %c0_81], %178 {strides = array<i32>} : memref<8x32xbf16, #tpu.memory_space<vmem>>, vector<8x32xbf16>,
    } else {
    }
    %5 = arith.truncf %1 : vector<8x32xf32> to vector<8x32xbf16>
    %c0_3 = arith.constant 0 : index
    %c0_4 = arith.constant 0 : index
    %6 = vector.load %arg4[%c0_3, %c0_4] : memref<32x32xbf16, #tpu.memory_space<vmem>>, vector<32x32xbf16>
    %cst = arith.constant dense<0.000000e+00> : vector<8x32xf32>
    %7 = tpu.matmul %5, %6, %cst {dimension_numbers = #tpu.dot_dimension_numbers<[1], [0], [0], [1], [0, 0, 1, 1], [], []>} : vector<8x32xbf16>, vector<32x32xbf16>, vector<8x32xf32> -> vector<8x32xf32>
    %8 = arith.truncf %7 : vector<8x32xf32> to vector<8x32xbf16>
    %c0_5 = arith.constant 0 : index
    %c0_6 = arith.constant 0 : index
    %9 = vector.load %arg17[%c0_5, %c0_6] : memref<8x32xbf16, #tpu.memory_space<vmem>>, vector<8x32xbf16>
    %c0_7 = arith.constant 0 : index
    %c0_8 = arith.constant 0 : index
    %10 = vector.load %arg18[%c0_7, %c0_8] : memref<8x32xbf16, #tpu.memory_space<vmem>>, vector<8x32xbf16>
    %cst_9 = arith.constant 0.000000e+00 : f32
    %11 = vector.broadcast %cst_9 : f32 to vector<8x32xf32>
    %12 = vector.extract_strided_slice %8 {offsets = [0, 0], sizes = [8, 8], strides = [1, 1]} : vector<8x32xbf16> to vector<8x8xbf16>
    %13 = vector.extract_strided_slice %9 {offsets = [0, 0], sizes = [8, 8], strides = [1, 1]} : vector<8x32xbf16> to vector<8x8xbf16>
    %14 = vector.extract_strided_slice %10 {offsets = [0, 0], sizes = [8, 8], strides = [1, 1]} : vector<8x32xbf16> to vector<8x8xbf16>
    %cst_10 = arith.constant dense<0.000000e+00> : vector<8x8xf32>
    %15 = tpu.matmul %12, %13, %cst_10 {dimension_numbers = #tpu.dot_dimension_numbers<[1], [1], [0], [0], [0, 0, 1, 0], [], []>} : vector<8x8xbf16>, vector<8x8xbf16>, vector<8x8xf32> -> vector<8x8xf32>
    %cst_11 = arith.constant dense<0xFF800000> : vector<8xf32>
    %16 = vector.multi_reduction <maximumf>, %15, %cst_11 [1] : vector<8x8xf32> to vector<8xf32>
    %17 = vector.shape_cast %16 : vector<8xf32> to vector<8x1xf32>
    %18 = vector.broadcast %17 : vector<8x1xf32> to vector<8x8xf32>
    %19 = arith.subf %15, %18 : vector<8x8xf32>
    %20 = math.exp %19 : vector<8x8xf32>
    %cst_12 = arith.constant dense<0.000000e+00> : vector<8xf32>
    %21 = vector.multi_reduction <add>, %20, %cst_12 [1] : vector<8x8xf32> to vector<8xf32>
    %22 = vector.shape_cast %21 : vector<8xf32> to vector<8x1xf32>
    %23 = tpu.reciprocal %22 {approx = true} : vector<8x1xf32> -> vector<8x1xf32>
    %24 = vector.broadcast %23 : vector<8x1xf32> to vector<8x8xf32>
    %25 = arith.mulf %20, %24 : vector<8x8xf32>
    %26 = arith.truncf %25 : vector<8x8xf32> to vector<8x8xbf16>
    %cst_13 = arith.constant dense<0.000000e+00> : vector<8x8xf32>
    %27 = tpu.matmul %26, %14, %cst_13 {dimension_numbers = #tpu.dot_dimension_numbers<[1], [0], [0], [1], [0, 0, 1, 1], [], []>} : vector<8x8xbf16>, vector<8x8xbf16>, vector<8x8xf32> -> vector<8x8xf32>
    %28 = arith.truncf %27 : vector<8x8xf32> to vector<8x8xbf16>
    %c0_14 = arith.constant 0 : index
    %c0_15 = arith.constant 0 : index
    %29 = vector.load %arg6[%c0_14, %c0_15] : memref<32x32xbf16, #tpu.memory_space<vmem>>, vector<8x32xbf16>
    %cst_16 = arith.constant dense<0.000000e+00> : vector<8x32xf32>
    %30 = tpu.matmul %28, %29, %cst_16 {dimension_numbers = #tpu.dot_dimension_numbers<[1], [0], [0], [1], [0, 0, 1, 1], [], []>} : vector<8x8xbf16>, vector<8x32xbf16>, vector<8x32xf32> -> vector<8x32xf32>
    %31 = arith.addf %11, %30 : vector<8x32xf32>
    %32 = vector.extract_strided_slice %8 {offsets = [0, 8], sizes = [8, 8], strides = [1, 1]} : vector<8x32xbf16> to vector<8x8xbf16>
    %33 = vector.extract_strided_slice %9 {offsets = [0, 8], sizes = [8, 8], strides = [1, 1]} : vector<8x32xbf16> to vector<8x8xbf16>
    %34 = vector.extract_strided_slice %10 {offsets = [0, 8], sizes = [8, 8], strides = [1, 1]} : vector<8x32xbf16> to vector<8x8xbf16>
    %cst_17 = arith.constant dense<0.000000e+00> : vector<8x8xf32>
    %35 = tpu.matmul %32, %33, %cst_17 {dimension_numbers = #tpu.dot_dimension_numbers<[1], [1], [0], [0], [0, 0, 1, 0], [], []>} : vector<8x8xbf16>, vector<8x8xbf16>, vector<8x8xf32> -> vector<8x8xf32>
    %cst_18 = arith.constant dense<0xFF800000> : vector<8xf32>
    %36 = vector.multi_reduction <maximumf>, %35, %cst_18 [1] : vector<8x8xf32> to vector<8xf32>
    %37 = vector.shape_cast %36 : vector<8xf32> to vector<8x1xf32>
    %38 = vector.broadcast %37 : vector<8x1xf32> to vector<8x8xf32>
    %39 = arith.subf %35, %38 : vector<8x8xf32>
    %40 = math.exp %39 : vector<8x8xf32>
    %cst_19 = arith.constant dense<0.000000e+00> : vector<8xf32>
    %41 = vector.multi_reduction <add>, %40, %cst_19 [1] : vector<8x8xf32> to vector<8xf32>
    %42 = vector.shape_cast %41 : vector<8xf32> to vector<8x1xf32>
    %43 = tpu.reciprocal %42 {approx = true} : vector<8x1xf32> -> vector<8x1xf32>
    %44 = vector.broadcast %43 : vector<8x1xf32> to vector<8x8xf32>
    %45 = arith.mulf %40, %44 : vector<8x8xf32>
    %46 = arith.truncf %45 : vector<8x8xf32> to vector<8x8xbf16>
    %cst_20 = arith.constant dense<0.000000e+00> : vector<8x8xf32>
    %47 = tpu.matmul %46, %34, %cst_20 {dimension_numbers = #tpu.dot_dimension_numbers<[1], [0], [0], [1], [0, 0, 1, 1], [], []>} : vector<8x8xbf16>, vector<8x8xbf16>, vector<8x8xf32> -> vector<8x8xf32>
    %48 = arith.truncf %47 : vector<8x8xf32> to vector<8x8xbf16>
    %c8 = arith.constant 8 : index
    %c0_21 = arith.constant 0 : index
    %49 = vector.load %arg6[%c8, %c0_21] : memref<32x32xbf16, #tpu.memory_space<vmem>>, vector<8x32xbf16>
    %cst_22 = arith.constant dense<0.000000e+00> : vector<8x32xf32>
    %50 = tpu.matmul %48, %49, %cst_22 {dimension_numbers = #tpu.dot_dimension_numbers<[1], [0], [0], [1], [0, 0, 1, 1], [], []>} : vector<8x8xbf16>, vector<8x32xbf16>, vector<8x32xf32> -> vector<8x32xf32>
    %51 = arith.addf %31, %50 : vector<8x32xf32>
    %52 = vector.extract_strided_slice %8 {offsets = [0, 16], sizes = [8, 8], strides = [1, 1]} : vector<8x32xbf16> to vector<8x8xbf16>
    %53 = vector.extract_strided_slice %9 {offsets = [0, 16], sizes = [8, 8], strides = [1, 1]} : vector<8x32xbf16> to vector<8x8xbf16>
    %54 = vector.extract_strided_slice %10 {offsets = [0, 16], sizes = [8, 8], strides = [1, 1]} : vector<8x32xbf16> to vector<8x8xbf16>
    %cst_23 = arith.constant dense<0.000000e+00> : vector<8x8xf32>
    %55 = tpu.matmul %52, %53, %cst_23 {dimension_numbers = #tpu.dot_dimension_numbers<[1], [1], [0], [0], [0, 0, 1, 0], [], []>} : vector<8x8xbf16>, vector<8x8xbf16>, vector<8x8xf32> -> vector<8x8xf32>
    %cst_24 = arith.constant dense<0xFF800000> : vector<8xf32>
    %56 = vector.multi_reduction <maximumf>, %55, %cst_24 [1] : vector<8x8xf32> to vector<8xf32>
    %57 = vector.shape_cast %56 : vector<8xf32> to vector<8x1xf32>
    %58 = vector.broadcast %57 : vector<8x1xf32> to vector<8x8xf32>
    %59 = arith.subf %55, %58 : vector<8x8xf32>
    %60 = math.exp %59 : vector<8x8xf32>
    %cst_25 = arith.constant dense<0.000000e+00> : vector<8xf32>
    %61 = vector.multi_reduction <add>, %60, %cst_25 [1] : vector<8x8xf32> to vector<8xf32>
    %62 = vector.shape_cast %61 : vector<8xf32> to vector<8x1xf32>
    %63 = tpu.reciprocal %62 {approx = true} : vector<8x1xf32> -> vector<8x1xf32>
    %64 = vector.broadcast %63 : vector<8x1xf32> to vector<8x8xf32>
    %65 = arith.mulf %60, %64 : vector<8x8xf32>
    %66 = arith.truncf %65 : vector<8x8xf32> to vector<8x8xbf16>
    %cst_26 = arith.constant dense<0.000000e+00> : vector<8x8xf32>
    %67 = tpu.matmul %66, %54, %cst_26 {dimension_numbers = #tpu.dot_dimension_numbers<[1], [0], [0], [1], [0, 0, 1, 1], [], []>} : vector<8x8xbf16>, vector<8x8xbf16>, vector<8x8xf32> -> vector<8x8xf32>
    %68 = arith.truncf %67 : vector<8x8xf32> to vector<8x8xbf16>
    %c16 = arith.constant 16 : index
    %c0_27 = arith.constant 0 : index
    %69 = vector.load %arg6[%c16, %c0_27] : memref<32x32xbf16, #tpu.memory_space<vmem>>, vector<8x32xbf16>
    %cst_28 = arith.constant dense<0.000000e+00> : vector<8x32xf32>
    %70 = tpu.matmul %68, %69, %cst_28 {dimension_numbers = #tpu.dot_dimension_numbers<[1], [0], [0], [1], [0, 0, 1, 1], [], []>} : vector<8x8xbf16>, vector<8x32xbf16>, vector<8x32xf32> -> vector<8x32xf32>
    %71 = arith.addf %51, %70 : vector<8x32xf32>
    %72 = vector.extract_strided_slice %8 {offsets = [0, 24], sizes = [8, 8], strides = [1, 1]} : vector<8x32xbf16> to vector<8x8xbf16>
    %73 = vector.extract_strided_slice %9 {offsets = [0, 24], sizes = [8, 8], strides = [1, 1]} : vector<8x32xbf16> to vector<8x8xbf16>
    %74 = vector.extract_strided_slice %10 {offsets = [0, 24], sizes = [8, 8], strides = [1, 1]} : vector<8x32xbf16> to vector<8x8xbf16>
    %cst_29 = arith.constant dense<0.000000e+00> : vector<8x8xf32>
    %75 = tpu.matmul %72, %73, %cst_29 {dimension_numbers = #tpu.dot_dimension_numbers<[1], [1], [0], [0], [0, 0, 1, 0], [], []>} : vector<8x8xbf16>, vector<8x8xbf16>, vector<8x8xf32> -> vector<8x8xf32>
    %cst_30 = arith.constant dense<0xFF800000> : vector<8xf32>
    %76 = vector.multi_reduction <maximumf>, %75, %cst_30 [1] : vector<8x8xf32> to vector<8xf32>
    %77 = vector.shape_cast %76 : vector<8xf32> to vector<8x1xf32>
    %78 = vector.broadcast %77 : vector<8x1xf32> to vector<8x8xf32>
    %79 = arith.subf %75, %78 : vector<8x8xf32>
    %80 = math.exp %79 : vector<8x8xf32>
    %cst_31 = arith.constant dense<0.000000e+00> : vector<8xf32>
    %81 = vector.multi_reduction <add>, %80, %cst_31 [1] : vector<8x8xf32> to vector<8xf32>
    %82 = vector.shape_cast %81 : vector<8xf32> to vector<8x1xf32>
    %83 = tpu.reciprocal %82 {approx = true} : vector<8x1xf32> -> vector<8x1xf32>
    %84 = vector.broadcast %83 : vector<8x1xf32> to vector<8x8xf32>
    %85 = arith.mulf %80, %84 : vector<8x8xf32>
    %86 = arith.truncf %85 : vector<8x8xf32> to vector<8x8xbf16>
    %cst_32 = arith.constant dense<0.000000e+00> : vector<8x8xf32>
    %87 = tpu.matmul %86, %74, %cst_32 {dimension_numbers = #tpu.dot_dimension_numbers<[1], [0], [0], [1], [0, 0, 1, 1], [], []>} : vector<8x8xbf16>, vector<8x8xbf16>, vector<8x8xf32> -> vector<8x8xf32>
    %88 = arith.truncf %87 : vector<8x8xf32> to vector<8x8xbf16>
    %c24 = arith.constant 24 : index
    %c0_33 = arith.constant 0 : index
    %89 = vector.load %arg6[%c24, %c0_33] : memref<32x32xbf16, #tpu.memory_space<vmem>>, vector<8x32xbf16>
    %cst_34 = arith.constant dense<0.000000e+00> : vector<8x32xf32>
    %90 = tpu.matmul %88, %89, %cst_34 {dimension_numbers = #tpu.dot_dimension_numbers<[1], [0], [0], [1], [0, 0, 1, 1], [], []>} : vector<8x8xbf16>, vector<8x32xbf16>, vector<8x32xf32> -> vector<8x32xf32>
    %91 = arith.addf %71, %90 : vector<8x32xf32>
    %c0_35 = arith.constant 0 : index
    %c0_36 = arith.constant 0 : index
    %92 = vector.load %arg7[%c0_35, %c0_36] : memref<1x32xf32, #tpu.memory_space<vmem>>, vector<1x32xf32>
    %93 = vector.broadcast %92 : vector<1x32xf32> to vector<8x32xf32>
    %94 = arith.addf %91, %93 : vector<8x32xf32>
    %95 = arith.addf %1, %94 : vector<8x32xf32>
    %c0_37 = arith.constant 0 : index
    %c0_38 = arith.constant 0 : index
    %96 = vector.load %arg8[%c0_37, %c0_38] : memref<1x32xf32, #tpu.memory_space<vmem>>, vector<1x32xf32>
    %c0_39 = arith.constant 0 : index
    %c0_40 = arith.constant 0 : index
    %97 = vector.load %arg9[%c0_39, %c0_40] : memref<1x32xf32, #tpu.memory_space<vmem>>, vector<1x32xf32>
    %cst_41 = arith.constant dense<0.000000e+00> : vector<8xf32>
    %98 = vector.multi_reduction <add>, %95, %cst_41 [1] : vector<8x32xf32> to vector<8xf32>
    %99 = vector.shape_cast %98 : vector<8xf32> to vector<8x1xf32>
    %cst_42 = arith.constant 3.200000e+01 : f32
    %100 = vector.broadcast %cst_42 : f32 to vector<8x1xf32>
    %101 = arith.divf %99, %100 : vector<8x1xf32>
    %102 = vector.broadcast %101 : vector<8x1xf32> to vector<8x32xf32>
    %103 = arith.subf %95, %102 : vector<8x32xf32>
    %104 = arith.mulf %103, %103 : vector<8x32xf32>
    %cst_43 = arith.constant dense<0.000000e+00> : vector<8xf32>
    %105 = vector.multi_reduction <add>, %104, %cst_43 [1] : vector<8x32xf32> to vector<8xf32>
    %106 = vector.shape_cast %105 : vector<8xf32> to vector<8x1xf32>
    %cst_44 = arith.constant 3.200000e+01 : f32
    %107 = vector.broadcast %cst_44 : f32 to vector<8x1xf32>
    %108 = arith.divf %106, %107 : vector<8x1xf32>
    %109 = vector.broadcast %101 : vector<8x1xf32> to vector<8x32xf32>
    %110 = arith.subf %95, %109 : vector<8x32xf32>
    %cst_45 = arith.constant 9.99999974E-6 : f32
    %111 = vector.broadcast %cst_45 : f32 to vector<8x1xf32>
    %112 = arith.addf %108, %111 : vector<8x1xf32>
    %113 = math.rsqrt %112 : vector<8x1xf32>
    %114 = vector.broadcast %113 : vector<8x1xf32> to vector<8x32xf32>
    %115 = arith.mulf %110, %114 : vector<8x32xf32>
    %116 = vector.broadcast %96 : vector<1x32xf32> to vector<8x32xf32>
    %117 = arith.mulf %115, %116 : vector<8x32xf32>
    %118 = vector.broadcast %97 : vector<1x32xf32> to vector<8x32xf32>
    %119 = arith.addf %117, %118 : vector<8x32xf32>
    %120 = arith.truncf %119 : vector<8x32xf32> to vector<8x32xbf16>
    %c0_46 = arith.constant 0 : index
    %c0_47 = arith.constant 0 : index
    %121 = vector.load %arg13[%c0_46, %c0_47] : memref<1x64xf32, #tpu.memory_space<vmem>>, vector<1x64xf32>
    %cst_48 = arith.constant 0.000000e+00 : f32
    %122 = vector.broadcast %cst_48 : f32 to vector<8x32xf32>
    %c0_49 = arith.constant 0 : index
    %c0_50 = arith.constant 0 : index
    %123 = vector.load %arg12[%c0_49, %c0_50] : memref<32x64xbf16, #tpu.memory_space<vmem>>, vector<32x64xbf16>
    %cst_51 = arith.constant dense<0.000000e+00> : vector<8x64xf32>
    %124 = tpu.matmul %120, %123, %cst_51 {dimension_numbers = #tpu.dot_dimension_numbers<[1], [0], [0], [1], [0, 0, 1, 1], [], []>} : vector<8x32xbf16>, vector<32x64xbf16>, vector<8x64xf32> -> vector<8x64xf32>
    %125 = vector.broadcast %121 : vector<1x64xf32> to vector<8x64xf32>
    %126 = arith.addf %124, %125 : vector<8x64xf32>
    %cst_52 = arith.constant 5.000000e-01 : f32
    %127 = vector.broadcast %cst_52 : f32 to vector<8x64xf32>
    %128 = arith.mulf %127, %126 : vector<8x64xf32>
    %cst_53 = arith.constant 0.707106769 : f32
    %129 = vector.broadcast %cst_53 : f32 to vector<8x64xf32>
    %130 = arith.mulf %126, %129 : vector<8x64xf32>
    %131 = math.erf %130 : vector<8x64xf32>
    %cst_54 = arith.constant 1.000000e+00 : f32
    %132 = vector.broadcast %cst_54 : f32 to vector<8x64xf32>
    %133 = arith.addf %132, %131 : vector<8x64xf32>
    %134 = arith.mulf %128, %133 : vector<8x64xf32>
    %135 = arith.truncf %134 : vector<8x64xf32> to vector<8x64xbf16>
    %c0_55 = arith.constant 0 : index
    %c0_56 = arith.constant 0 : index
    %136 = vector.load %arg14[%c0_55, %c0_56] : memref<64x32xbf16, #tpu.memory_space<vmem>>, vector<64x32xbf16>
    %cst_57 = arith.constant dense<0.000000e+00> : vector<8x32xf32>
    %137 = tpu.matmul %135, %136, %cst_57 {dimension_numbers = #tpu.dot_dimension_numbers<[1], [0], [0], [1], [0, 0, 1, 1], [], []>} : vector<8x64xbf16>, vector<64x32xbf16>, vector<8x32xf32> -> vector<8x32xf32>
    %138 = arith.addf %122, %137 : vector<8x32xf32>
    %c0_58 = arith.constant 0 : index
    %c0_59 = arith.constant 0 : index
    %139 = vector.load %arg15[%c0_58, %c0_59] : memref<1x32xf32, #tpu.memory_space<vmem>>, vector<1x32xf32>
    %140 = vector.broadcast %139 : vector<1x32xf32> to vector<8x32xf32>
    %141 = arith.addf %138, %140 : vector<8x32xf32>
    %142 = arith.addf %119, %141 : vector<8x32xf32>
    %c0_60 = arith.constant 0 : index
    %c0_61 = arith.constant 0 : index
    %143 = vector.load %arg10[%c0_60, %c0_61] : memref<1x32xf32, #tpu.memory_space<vmem>>, vector<1x32xf32>
    %c0_62 = arith.constant 0 : index
    %c0_63 = arith.constant 0 : index
    %144 = vector.load %arg11[%c0_62, %c0_63] : memref<1x32xf32, #tpu.memory_space<vmem>>, vector<1x32xf32>
    %cst_64 = arith.constant dense<0.000000e+00> : vector<8xf32>
    %145 = vector.multi_reduction <add>, %142, %cst_64 [1] : vector<8x32xf32> to vector<8xf32>
    %146 = vector.shape_cast %145 : vector<8xf32> to vector<8x1xf32>
    %cst_65 = arith.constant 3.200000e+01 : f32
    %147 = vector.broadcast %cst_65 : f32 to vector<8x1xf32>
    %148 = arith.divf %146, %147 : vector<8x1xf32>
    %149 = vector.broadcast %148 : vector<8x1xf32> to vector<8x32xf32>
    %150 = arith.subf %142, %149 : vector<8x32xf32>
    %151 = arith.mulf %150, %150 : vector<8x32xf32>
    %cst_66 = arith.constant dense<0.000000e+00> : vector<8xf32>
    %152 = vector.multi_reduction <add>, %151, %cst_66 [1] : vector<8x32xf32> to vector<8xf32>
    %153 = vector.shape_cast %152 : vector<8xf32> to vector<8x1xf32>
    %cst_67 = arith.constant 3.200000e+01 : f32
    %154 = vector.broadcast %cst_67 : f32 to vector<8x1xf32>
    %155 = arith.divf %153, %154 : vector<8x1xf32>
    %156 = vector.broadcast %148 : vector<8x1xf32> to vector<8x32xf32>
    %157 = arith.subf %142, %156 : vector<8x32xf32>
    %cst_68 = arith.constant 9.99999974E-6 : f32
    %158 = vector.broadcast %cst_68 : f32 to vector<8x1xf32>
    %159 = arith.addf %155, %158 : vector<8x1xf32>
    %160 = math.rsqrt %159 : vector<8x1xf32>
    %161 = vector.broadcast %160 : vector<8x1xf32> to vector<8x32xf32>
    %162 = arith.mulf %157, %161 : vector<8x32xf32>
    %163 = vector.broadcast %143 : vector<1x32xf32> to vector<8x32xf32>
    %164 = arith.mulf %162, %163 : vector<8x32xf32>
    %165 = vector.broadcast %144 : vector<1x32xf32> to vector<8x32xf32>
    %166 = arith.addf %164, %165 : vector<8x32xf32>
    %c0_69 = arith.constant 0 : index
    %c0_70 = arith.constant 0 : index
    %c0_71 = arith.constant 0 : index
    %167 = vector.load %arg16[%c0_69, %c0_70, %c0_71] : memref<1x8x32xf32, #tpu.memory_space<vmem>>, vector<1x8x32xf32>
    %168 = vector.shape_cast %167 : vector<1x8x32xf32> to vector<8x32xf32>
    %169 = vector.shape_cast %166 : vector<8x32xf32> to vector<1x8x32xf32>
    tpu.vector_store %arg16[%c0_69, %c0_70, %c0_71], %169 {strides = array<i32>} : memref<1x8x32xf32, #tpu.memory_space<vmem>>, vector<1x8x32xf32>,
    return
  }
  func.func @transform_0(%arg0: i32, %arg1: i32) -> (i32, i32, i32) {
    %c0_i32 = arith.constant 0 : i32
    %c0_i32_0 = arith.constant 0 : i32
    return %arg0, %arg1, %c0_i32 : i32, i32, i32
  }
  func.func @transform_1(%arg0: i32, %arg1: i32) -> (i32, i32, i32) {
    %c0_i32 = arith.constant 0 : i32
    %c0_i32_0 = arith.constant 0 : i32
    %c0_i32_1 = arith.constant 0 : i32
    return %arg0, %c0_i32, %c0_i32_0 : i32, i32, i32
  }
  func.func @transform_2(%arg0: i32, %arg1: i32) -> (i32, i32) {
    %c0_i32 = arith.constant 0 : i32
    %c0_i32_0 = arith.constant 0 : i32
    %c0_i32_1 = arith.constant 0 : i32
    return %c0_i32, %c0_i32_0 : i32, i32
  }
  func.func @transform_3(%arg0: i32, %arg1: i32) -> (i32, i32) {
    %c0_i32 = arith.constant 0 : i32
    %c0_i32_0 = arith.constant 0 : i32
    %c0_i32_1 = arith.constant 0 : i32
    return %c0_i32, %c0_i32_0 : i32, i32
  }
  func.func @transform_4(%arg0: i32, %arg1: i32) -> (i32, i32) {
    %c0_i32 = arith.constant 0 : i32
    %c0_i32_0 = arith.constant 0 : i32
    %c0_i32_1 = arith.constant 0 : i32
    return %c0_i32, %c0_i32_0 : i32, i32
  }
  func.func @transform_5(%arg0: i32, %arg1: i32) -> (i32, i32) {
    %c0_i32 = arith.constant 0 : i32
    %c0_i32_0 = arith.constant 0 : i32
    %c0_i32_1 = arith.constant 0 : i32
    return %c0_i32, %c0_i32_0 : i32, i32
  }
  func.func @transform_6(%arg0: i32, %arg1: i32) -> (i32, i32) {
    %c0_i32 = arith.constant 0 : i32
    %c0_i32_0 = arith.constant 0 : i32
    %c0_i32_1 = arith.constant 0 : i32
    return %c0_i32, %c0_i32_0 : i32, i32
  }
  func.func @transform_7(%arg0: i32, %arg1: i32) -> (i32, i32) {
    %c0_i32 = arith.constant 0 : i32
    %c0_i32_0 = arith.constant 0 : i32
    %c0_i32_1 = arith.constant 0 : i32
    return %c0_i32, %c0_i32_0 : i32, i32
  }
  func.func @transform_8(%arg0: i32, %arg1: i32) -> (i32, i32) {
    %c0_i32 = arith.constant 0 : i32
    %c0_i32_0 = arith.constant 0 : i32
    %c0_i32_1 = arith.constant 0 : i32
    return %c0_i32, %c0_i32_0 : i32, i32
  }
  func.func @transform_9(%arg0: i32, %arg1: i32) -> (i32, i32) {
    %c0_i32 = arith.constant 0 : i32
    %c0_i32_0 = arith.constant 0 : i32
    %c0_i32_1 = arith.constant 0 : i32
    return %c0_i32, %c0_i32_0 : i32, i32
  }
  func.func @transform_10(%arg0: i32, %arg1: i32) -> (i32, i32) {
    %c0_i32 = arith.constant 0 : i32
    %c0_i32_0 = arith.constant 0 : i32
    %c0_i32_1 = arith.constant 0 : i32
    return %c0_i32, %c0_i32_0 : i32, i32
  }
  func.func @transform_11(%arg0: i32, %arg1: i32) -> (i32, i32) {
    %c0_i32 = arith.constant 0 : i32
    %c0_i32_0 = arith.constant 0 : i32
    %c0_i32_1 = arith.constant 0 : i32
    return %c0_i32, %c0_i32_0 : i32, i32
  }
  func.func @transform_12(%arg0: i32, %arg1: i32) -> (i32, i32) {
    %c0_i32 = arith.constant 0 : i32
    %c0_i32_0 = arith.constant 0 : i32
    %c0_i32_1 = arith.constant 0 : i32
    return %c0_i32, %c0_i32_0 : i32, i32
  }
  func.func @transform_13(%arg0: i32, %arg1: i32) -> (i32, i32) {
    %c0_i32 = arith.constant 0 : i32
    %c0_i32_0 = arith.constant 0 : i32
    %c0_i32_1 = arith.constant 0 : i32
    return %c0_i32, %c0_i32_0 : i32, i32
  }
  func.func @transform_14(%arg0: i32, %arg1: i32) -> (i32, i32, i32) {
    %c0_i32 = arith.constant 0 : i32
    %c0_i32_0 = arith.constant 0 : i32
    return %arg0, %arg1, %c0_i32 : i32, i32, i32
  }
}

</mosaic_0001>

<bundles_post_ra>
// kernel: tpu_custom_call.1
= control target key start
LH: loop header
LB: loop body
LE: loop exit
PB: predicated region body
PF: predicated region fallthrough
CT: control target
= control target key end

     0   :  { %s2900_s0 = inlined_call_operand.vmem [shape: f32[2,8,32], index: 0, kind: input, shape index: {}]   ;;  %s2901_s1 = inlined_call_operand.hbm [shape: bf16[2,8,32], index: 1, kind: input, shape index: {}]   ;;  %s2902_s2 = inlined_call_operand.vmem [shape: bf16[32,32], index: 2, kind: input, shape index: {}]   ;;  %s2903_s3 = inlined_call_operand.vmem [shape: bf16[32,64], index: 3, kind: input, shape index: {}]   ;;  %s2904_s4 = inlined_call_operand.hbm [shape: bf16[32,32], index: 4, kind: input, shape index: {}]   ;;  %s2905_s5 = inlined_call_operand.hbm [shape: f32[1,32], index: 5, kind: input, shape index: {}]   ;;  %s2906_s6 = inlined_call_operand.hbm [shape: f32[1,32], index: 6, kind: input, shape index: {}]   ;;  %s2907_s7 = inlined_call_operand.hbm [shape: f32[1,32], index: 7, kind: input, shape index: {}]   ;;  %s2908_s8 = inlined_call_operand.hbm [shape: f32[1,32], index: 8, kind: input, shape index: {}]   ;;  %s2909_s9 = inlined_call_operand.hbm [shape: f32[1,32], index: 9, kind: input, shape index: {}]   ;;  %s2910_s10 = inlined_call_operand.vmem [shape: bf16[32,64], index: 10, kind: input, shape index: {}]   ;;  %s2911_s11 = inlined_call_operand.vmem [shape: f32[1,64], index: 11, kind: input, shape index: {}]   ;;  %s2912_s12 = inlined_call_operand.vmem [shape: bf16[64,32], index: 12, kind: input, shape index: {}]   ;;  %s2913_s13 = inlined_call_operand.vmem [shape: f32[1,32], index: 13, kind: input, shape index: {}]   ;;  %s2914_s14 = inlined_call_operand.hbm [shape: f32[2,8,32], index: 14, kind: output, shape index: {}]  }
   0x1   :  { %2920 = sst [smem:[#allocation22_spill]] %s2904_s4 }
   0x2   :  { %2921 = sst [smem:[#allocation23_spill]] %s2905_s5 }
   0x3   :  { %2922 = sst [smem:[#allocation24_spill]] %s2906_s6 }
   0x4   :  { %2923 = sst [smem:[#allocation25_spill]] %s2907_s7 }
   0x5   :  { %2924 = sst [smem:[#allocation26_spill]] %s2908_s8 }
   0x6   :  { %2925 = sst [smem:[#allocation27_spill]] %s2909_s9 }
   0x7   :  { %2926 = sst [smem:[#allocation28_spill]] %s2910_s10 }
   0x8   :  { %2927 = sst [smem:[#allocation29_spill]] %s2911_s11 }
   0x9   :  { %2928 = sst [smem:[#allocation30_spill]] %s2912_s12 }
   0xa   :  { %2929 = sst [smem:[#allocation31_spill]] %s2913_s13 }
   0xb   :  { %2930 = sst [smem:[#allocation32_spill]] %s2914_s14 }
   0xc   :  { %19 = vsyncpa [#allocation5], 0 }
   0xd   :  { %21 = vsyncpa [#allocation5 + $0x1], 0 }
   0xe   :  { %22 = vsyncpa [#allocation8], 0 }
   0xf   :  { %23 = vsyncpa [#allocation11], 0 }
  0x10   :  { %24 = vsyncpa [#allocation14], 0 }
  0x11   :  { %25 = vsyncpa [#allocation6], 0 }
  0x12   :  { %27 = vsyncpa [#allocation6 + $0x1], 0  ;;  %s2515_s29 = smov 0   ;;  %s2517_s30 = smov 0  }
  0x13   :  { %s2519_s15 = smov 0   ;;  %s2521_s16 = smov 0  }
  0x14   :  { %s2523_s17 = smov 0   ;;  %s2525_s18 = smov 0  }
  0x15 LB: > { %s2915_s19 = sadd.s32 4294967295, %s2422_s18   ;;  %p1774_p0 = scmp.ge.s32.totalorder %s2422_s18, 1  ;;  %s2422_s18 = sphi %s2525_s18, %s33_s18   ;;  %s2418_s17 = sphi %s2523_s17, %s2958_s17   ;;  %s2414_s16 = sphi %s2521_s16, %s2957_s16   ;;  %s2410_s15 = sphi %s2519_s15, %s2956_s15   ;;  %s2406_s30 = sphi %s2517_s30, %s2955_s30   ;;  %s2402_s29 = sphi %s2515_s29, %s2954_s29  }
  0x16   : > { %p2549_p1 = scmp.eq.s32.totalorder %s2915_s19, 0  ;;  %p384_p2 = scmp.lt.s32.totalorder %s2422_s18, 3 }
  0x17   : > { %s2424_s22 = smov [#allocation7]   ;;  %s2425_s25 = smov [#allocation10]  }
  0x18   : > { %p2554_p3 = pnand %p1774_p0, %p384_p2  ;;  %s402_s23 = sshll.u32 %s2424_s22, 4  ;;  %s403_s23 = int_to_ptr.vmem [resolvable:$true] %s402_s23 }
  0x19   : > { %s427_s26 = sshll.u32 %s2425_s25, 4  ;;  %s2426_s27 = smov [#allocation13]   ;;  %s428_s26 = int_to_ptr.vmem [resolvable:$true] %s427_s26 }
  0x1a   : > { %s2932_s21 = scalar_select %p2554_p3, 1, 0 }
  0x1b   : > { %p2009_p4 = pneg %p2554_p3  ;;  %s449_s28 = sshll.u32 %s2426_s27, 4  ;;  %s450_s28 = int_to_ptr.vmem [resolvable:$true] %s449_s28 }
  0x1c   : > { %s2157_s22 = scalar_lea.vmem %s403_s23, 256  ;;  %p2165_p11 = scmp.lt.s32.totalorder %s403_s23, %s403_s23 }
  0x1d   : > { %p2563_p6 = pnand %p2009_p4, %p2549_p1  ;;  %p2158_p8 = scmp.ne.s32.totalorder %s403_s23, %s2157_s22 }
  0x1e   : > { %p2166_p12 = scmp.lt.s32.totalorder %s2157_s22, %s2157_s22 }
  0x1f   : > { %p2569_p7 = pneg %p2563_p6 }
  0x20   : > { %p2167_p13 = por %p2166_p12, %p2165_p11 }
  0x21   : > { %p2160_p9 = pnand %p2158_p8, %p2569_p7 }
  0x23   : > { %p2161_p10 = pneg %p2160_p9 }
  0x25   : > { %p2168_p0 = pnand %p2167_p13, %p2161_p10 }
  0x27   : > { %2171 = shalt.err (!%p2168_p0)
}
  0x28   : > { %s2427_s25 = smov 64   ;;  %s2428_s27 = smov 4  }
  0x29   : > { %s2935_s4 = sld [smem:[#allocation22_spill]]  ;;  %s2183_s11 = scalar_lea.vmem %s428_s26, 16 }
  0x2a   : > { %p2184_p2 = scmp.ne.s32.totalorder %s428_s26, %s2183_s11  ;;  %s2190_s12 = scalar_lea.vmem %s428_s26, 32 }
  0x2b   : > { %p2191_p9 = scmp.lt.s32.totalorder %s428_s26, %s428_s26  ;;  %p2192_p5 = scmp.lt.s32.totalorder %s2190_s12, %s2183_s11 }
  0x2c   : > { %p2186_p4 = pnand %p2184_p2, %p2569_p7 }
  0x2d   : > { %p2193_p11 = por %p2192_p5, %p2191_p9 }
  0x2e   : > { %p2187_p8 = pneg %p2186_p4 }
  0x2f   : > { %2012 = dma.hbm_to_vmem [thread:$0]  (!%p2563_p6), %s2935_s4, 256, %s403_s23, [#allocation8], %s2427_s25, %s2427_s25, %s2428_s27  }
  0x30   : > { %p2194_p10 = pnand %p2193_p11, %p2187_p8 }
  0x32   : > { %2197 = shalt.err (!%p2194_p10)
}
  0x33   : > { %s2936_s6 = sld [smem:[#allocation24_spill]]  ;;  %s2209_s13 = scalar_lea.vmem %s450_s28, 16 }
  0x34   : > { %p2210_p12 = scmp.ne.s32.totalorder %s450_s28, %s2209_s13  ;;  %s2216_s14 = scalar_lea.vmem %s450_s28, 32 }
  0x35   : > { %p2217_p2 = scmp.lt.s32.totalorder %s450_s28, %s450_s28  ;;  %p2218_p4 = scmp.lt.s32.totalorder %s2216_s14, %s2209_s13 }
  0x36   : > { %p2212_p13 = pnand %p2210_p12, %p2569_p7 }
  0x37   : > { %p2219_p3 = por %p2218_p4, %p2217_p2 }
  0x38   : > { %p2213_p0 = pneg %p2212_p13 }
  0x39   : > { %2018 = dma.hbm_to_vmem [thread:$0]  (!%p2563_p6), %s2936_s6, 16, %s428_s26, [#allocation11]  }
  0x3a   : > { %p2220_p5 = pnand %p2219_p3, %p2213_p0 }
  0x3c   : > { %2223 = shalt.err (!%p2220_p5)
}
  0x3d   : > { %s2937_s8 = sld [smem:[#allocation26_spill]]  ;;  %s2429_s10 = smov [#allocation9]  }
  0x3e   : > { %s416_s23 = sshll.u32 %s2429_s10, 4  ;;  %s2430_s26 = smov [#allocation12]   ;;  %s417_s23 = int_to_ptr.vmem [resolvable:$true] %s416_s23 }
  0x3f   : > { %s438_s25 = sshll.u32 %s2430_s26, 4  ;;  %s2235_s27 = scalar_lea.vmem %s417_s23, 16  ;;  %s439_s25 = int_to_ptr.vmem [resolvable:$true] %s438_s25 }
  0x40   : > { %p2236_p8 = scmp.ne.s32.totalorder %s417_s23, %s2235_s27  ;;  %s2242_s22 = scalar_lea.vmem %s417_s23, 32 }
  0x41   : > { %p2243_p3 = scmp.lt.s32.totalorder %s417_s23, %s417_s23  ;;  %p2244_p10 = scmp.lt.s32.totalorder %s2242_s22, %s2235_s27 }
  0x42   : > { %p2238_p9 = pnand %p2236_p8, %p2569_p7 }
  0x43   : > { %2024 = dma.hbm_to_vmem [thread:$0]  (!%p2563_p6), %s2937_s8, 16, %s450_s28, [#allocation14]  }
  0x44   : > { %p2239_p11 = pneg %p2238_p9  ;;  %p2245_p12 = por %p2244_p10, %p2243_p3 }
  0x46   : > { %p2246_p13 = pnand %p2245_p12, %p2239_p11 }
  0x48   : > { %2249 = shalt.err (!%p2246_p13)
}
  0x49   : > { %s2938_s5 = sld [smem:[#allocation23_spill]]  ;;  %s2261_s14 = scalar_lea.vmem %s439_s25, 16 }
  0x4a   : > { %p2262_p0 = scmp.ne.s32.totalorder %s439_s25, %s2261_s14  ;;  %s2268_s11 = scalar_lea.vmem %s439_s25, 32 }
  0x4b   : > { %p2269_p5 = scmp.lt.s32.totalorder %s439_s25, %s439_s25  ;;  %p2270_p8 = scmp.lt.s32.totalorder %s2268_s11, %s2261_s14 }
  0x4c   : > { %p2264_p2 = pnand %p2262_p0, %p2569_p7 }
  0x4d   : > { %p2271_p9 = por %p2270_p8, %p2269_p5 }
  0x4e   : > { %p2265_p4 = pneg %p2264_p2 }
  0x4f   : > { %2015 = dma.hbm_to_vmem [thread:$0]  (!%p2563_p6), %s2938_s5, 16, %s417_s23, [#allocation8]  }
  0x50   : > { %p2272_p3 = pnand %p2271_p9, %p2265_p4 }
  0x52   : > { %2275 = shalt.err (!%p2272_p3)
}
  0x53   : > { %s2939_s7 = sld [smem:[#allocation25_spill]]  ;;  %s2431_s23 = smov [#allocation15]  }
  0x54   : > { %s460_s26 = sshll.u32 %s2431_s23, 4  ;;  %s461_s26 = int_to_ptr.vmem [resolvable:$true] %s460_s26 }
  0x55   : > { %s2287_s27 = scalar_lea.vmem %s461_s26, 16  ;;  %s2294_s22 = scalar_lea.vmem %s461_s26, 32 }
  0x56   : > { %p2288_p11 = scmp.ne.s32.totalorder %s461_s26, %s2287_s27  ;;  %p2295_p13 = scmp.lt.s32.totalorder %s461_s26, %s461_s26 }
  0x57   : > { %p2296_p0 = scmp.lt.s32.totalorder %s2294_s22, %s2287_s27 }
  0x58   : > { %p2290_p10 = pnand %p2288_p11, %p2569_p7 }
  0x59   : > { %2021 = dma.hbm_to_vmem [thread:$0]  (!%p2563_p6), %s2939_s7, 16, %s439_s25, [#allocation11]  }
  0x5a   : > { %p2291_p12 = pneg %p2290_p10  ;;  %p2297_p2 = por %p2296_p0, %p2295_p13 }
  0x5c   : > { %p2298_p4 = pnand %p2297_p2, %p2291_p12 }
  0x5e   : > { %2301 = shalt.err (!%p2298_p4)
}
  0x5f   : > { %s2940_s9 = sld [smem:[#allocation27_spill]]  ;;  %s1773_s19 = sadd.s32 4294967294, %s2422_s18  }
  0x60   : > { %s45_s25 = sadd.s32 1, %s2418_s17  ;;  %s80_s24 = sadd.s32 1, %s2410_s15 }
  0x61   : > { %p47_p7 = scmp.ge.s32.totalorder %s45_s25, 2  ;;  %p87_p5 = scmp.ne.s32.totalorder %s2410_s15, %s2406_s30 }
  0x62   : > { %p88_p8 = scmp.eq.s32.totalorder %s2422_s18, 0  ;;  %p93_p3 = scmp.ne.s32.totalorder %s2406_s30, %s2402_s29 }
  0x63   : > { %s2960_s25 = smov (%p47_p7, %s45_s25), 0  ;;  %s2942_s12 = sadd.s32 4294967295, %s2422_s18  }
  0x64   : > { %p2623_p9 = por %p88_p8, %p87_p5  ;;  %s77_s11 = ssub.s32 %s2418_s17, %s2960_s25 }
  0x65   : > { %2027 = dma.hbm_to_vmem [thread:$0]  (!%p2563_p6), %s2940_s9, 16, %s461_s26, [#allocation14]  }
  0x66   : > { %p371_p6 = scmp.eq.s32.totalorder %s2942_s12, 1  ;;  %p78_p11 = scmp.eq.s32.totalorder %s77_s11, 0 }
  0x67   : > { %p2635_p10 = por %p2549_p1, %p93_p3  ;;  %p377_p13 = scmp.eq.s32.totalorder %s1773_s19, 1 }
  0x68   : > { %p2639_p12 = por %p371_p6, %p87_p5  ;;  %p2042_p2 = scmp.lt.s32.totalorder %s2422_s18, 2 }
  0x69   : > { %s2644_s26 = scalar_select %p78_p11, %s2410_s15, %s80_s24  }
  0x6a   : > { %p2646_p0 = por %p377_p13, %p93_p3  ;;  %s493_s22 = sand.u32 1, %s2410_s15  }
  0x6b   : > { %s1783_s13 = sshll.u32 %s2418_s17, 6  ;;  %s1782_s28 = sshll.u32 %s493_s22, 2 }
  0x6c   : > { %s502_s4 = scalar_lea.hbm %s2901_s1, %s1783_s13  ;;  %s497_s5 = scalar_lea.vmem [#allocation4], %s1782_s28 }
  0x6d   : > { %s504_s6 = sshll.u32 %s497_s5, 4  ;;  %p2658_p4 = pnand %p2042_p2, %p2623_p9  ;;  %s505_s6 = int_to_ptr.vmem [resolvable:$true] %s504_s6 }
  0x6e   : > { %s494_s19 = scalar_lea.sflag [#allocation5], %s493_s22  ;;  %s2315_s24 = scalar_lea.vmem %s505_s6, 64 }
  0x6f   : > { %p2304_p7 = pneg %p2658_p4  ;;  %p2316_p5 = scmp.ne.s32.totalorder %s505_s6, %s2315_s24 }
  0x70   : > { %s2432_s8 = smov [#allocation4]  }
  0x71   : > { %p2318_p8 = pnand %p2316_p5, %p2304_p7  ;;  %s2320_s9 = sshll.u32 %s2432_s8, 4  ;;  %s2321_s9 = int_to_ptr.vmem [resolvable:$false] %s2320_s9 }
  0x72   : > { %s2322_s13 = scalar_lea.vmem %s2321_s9, 128  ;;  %p2323_p6 = scmp.lt.s32.totalorder %s505_s6, %s2321_s9 }
  0x73   : > { %p2319_p3 = pneg %p2318_p8  ;;  %p2324_p11 = scmp.lt.s32.totalorder %s2322_s13, %s2315_s24 }
  0x75   : > { %p2325_p13 = por %p2324_p11, %p2323_p6 }
  0x77   : > { %p2326_p9 = pnand %p2325_p13, %p2319_p3 }
  0x79   : > { %2329 = shalt.err (!%p2326_p9)
}
  0x7a   : > { %2031 = dma.hbm_to_vmem [thread:$0]  (!%p2658_p4), %s502_s4, 64, %s505_s6, %s494_s19  }
  0x7b   : > { %p2947_p2 = scmp.ne.s32.totalorder %s2932_s21, 0 }
  0x7c   : > { %s2669_s5 = sand.u32 (!%p2947_p2), 1, %s2406_s30  }
  0x7d   : > { %513 = sbr.rel (%p2947_p2) target bundleno = 3646 (0xe3e), region = 76  ;;  %s1785_s8 = sshll.u32 (!%p2947_p2), %s2669_s5, 2 }
  0x7e   : > { %s516_s14 = scalar_lea.sflag (!%p2947_p2), [#allocation5], %s2669_s5  ;;  %s519_s22 = scalar_lea.vmem (!%p2947_p2), [#allocation4], %s1785_s8 }
  0x82   : > { %2381 = dma.done.wait (%p2635_p10), %s516_s14, 64  }
  0x83   : > { %2383 = vsyncadd (%p2635_p10), %s516_s14, 4294967232 }
  0x84   : > { %2385 = dma.done.wait (%p2549_p1), [#allocation8], 272  }
  0x85   : > { %2387 = vsyncadd (%p2549_p1), [#allocation8], 4294967024 }
  0x86   : > { %2389 = dma.done.wait (%p2549_p1), [#allocation11], 32  }
  0x87   : > { %2391 = vsyncadd (%p2549_p1), [#allocation11], 4294967264 }
  0x88   : > { %2393 = dma.done.wait (%p2549_p1), [#allocation14], 32  }
  0x89   : > { %2395 = vsyncadd (%p2549_p1), [#allocation14], 4294967264  ;;  %p595_p10 = scmp.lt.s32.totalorder %s2414_s16, 1  ;;  %v2433_v0 = vmov 0.0   ;;  %vm2434_vm0 = vmmov 0   ;;  %v2112_v1 = vld [vmem:[%s2903_s3 + $0x8] sm:$0xff]  }
  0x8a   : > { %1873 = vmatprep.subr.bf16.mxu0 %v2433_v0  ;;  %1877 = vmatprep.mubr.msk.bf16.mxu0 %vm2434_vm0, %v2433_v0  ;;  %v2113_v2 = vld [vmem:[%s2903_s3] sm:$0xff]   ;;  %v2114_v3 = vld [vmem:[%s2902_s2 + $0x8] sm:$0xff]   ;;  %vm625_vm1 = vcmask 261120   ;;  %vm670_vm2 = vcmask 257024   ;;  %vm743_vm3 = vcmask 64512   ;;  %s2435_s8 = smov 120  }
  0x8b   : > { %1881 = vmatprep.subr.bf16.mxu1 %v2433_v0  ;;  %1885 = vmatprep.mubr.msk.bf16.mxu1 %vm2434_vm0, %v2433_v0  ;;  %s596_s4 = scalar_select %p595_p10, %s2414_s16, 1  ;;  %v608_v4 = vld [vmem:[%s519_s22] sm:$0xf]  ;;  %v2115_v5 = vld [vmem:[%s2902_s2] sm:$0xff]   ;;  %vm805_vm4 = vcmask 1043456   ;;  %vm1531_vm5 = vcmask 523264  }
  0x8c   : > { %1874 = vmatpush3.bf16.msra.mxu0 %v2112_v1  ;;  %1882 = vmatpush3.bf16.msra.mxu1 %v2114_v3  ;;  %s2436_s14 = smov 96   ;;  %s2437_s22 = smov 112   ;;  %v969_v54 = vld [vmem:[#allocation7 + $0x4] sm:$0xf]  ;;  %v850_v58 = vld [vmem:[#allocation7] sm:$0xf] }
  0x8d   : > { %s1793_s6 = sshll.u32 %s596_s4, 3  ;;  %1875 = vmatprep.subr.bf16.mxu0 %v2433_v0  ;;  %1883 = vmatprep.subr.bf16.mxu1 %v2433_v0  ;;  %v974_v55 = vsel %vm805_vm4, %v969_v54, 0  ;;  %v1020_v61 = vsel %vm805_vm4, %v850_v58, 0  ;;  %s2438_s4 = smov 104  }
  0x8e   : > { %s601_s10 = scalar_lea.vmem %s2900_s0, %s1793_s6  ;;  %s2948_s9 = sld [smem:[#allocation28_spill]] }
  0x8f   : > { %v2713_v6 = vld [vmem:[%s601_s10] sm:$0xff]  ;;  %s2949_s11 = sld [smem:[#allocation30_spill]]  ;;  %s1792_s10 = sshll.u32 %s2669_s5, 3 }
  0x90   : > { %1876 = vmatpush3.bf16.msra.mxu0 %v2113_v2  ;;  %v679_v7 = vpack.c.bf16 %v2713_v6, %v2713_v6  ;;  %1884 = vmatpush3.bf16.msra.mxu1 %v2115_v5  ;;  %s2950_s6 = sld [smem:[#allocation29_spill]]  ;;  %s1831_s28 = sshll.u32 %s2414_s16, 7 }
  0x91   : > { %1889 = vmatprep.subr.bf16.mxu0 %v2433_v0  ;;  %1895 = vmatprep.subr.bf16.mxu1 %v2433_v0  ;;  %s2951_s21 = sld [smem:[#allocation31_spill]]  ;;  %s594_s12 = scalar_lea.vmem [#allocation16], %s1792_s10 }
  0x92   : > { %s1621_s19 = sshll.u32 %s594_s12, 4  ;;  %s1622_s19 = int_to_ptr.vmem [resolvable:$true] %s1621_s19 }
  0x93   : > { %1878 = vmatmul.mubr.msk.bf16.vlgmr.msra.gmra.mxu0 %vm625_vm1, %v608_v4  ;;  %1886 = vmatmul.mubr.msk.bf16.vlgmr.msra.gmra.mxu1 %vm625_vm1, %v679_v7 }
  0x94   : > { %1891 = vmatprep.mubr.msk.bf16.mxu0 %vm2434_vm0, %v2433_v0  ;;  %1897 = vmatprep.mubr.msk.bf16.mxu1 %vm2434_vm0, %v2433_v0 }
 0x153   : > { %v663_v8 = vpop.f32.mrf.mxu0  ;;  %v734_v11 = vpop.f32.mrf.mxu1 }
 0x154   : > { %v669_v9 = vpack.c.bf16 %v663_v8, %v663_v8  ;;  %v2732_v20 = vpack.c.bf16 %v734_v11, %v734_v11 }
 0x155   : > { %v1879_v10 = vpop.f32.mrf.mxu0  ;;  %v1887_v13 = vpop.f32.mrf.mxu1 }
 0x156   : > { %671 = vst.msk [vmem:[#allocation2] sm:$0xf] %vm670_vm2, %v669_v9 }
 0x157   : > { %v666_v12 = vpop.f32.mrf.mxu0  ;;  %v737_v15 = vpop.f32.mrf.mxu1 }
 0x159   : > { %v1880_v14 = vpop.f32.mrf.mxu0  ;;  %v1888_v16 = vpop.f32.mrf.mxu1 }
 0x15d   : > { %v741_v17 = vld [vmem:[#allocation2] sm:$0xf] }
 0x15e   : > { %v748_v18 = vsel %vm743_vm3, %v741_v17, 0  ;;  %v2728_v19 = vcombine.low %v741_v17, %v741_v17 }
 0x15f   : > { %1890 = vmatpush3.bf16.xpose.msra.mxu0 %v748_v18 }
 0x160   : > { %857 = vrot.lane.b32.xlu0 %v2728_v19, %s2435_s8  ;;  %1901 = vmatprep.subr.bf16.mxu0 %v2433_v0 }
 0x164   : > { %852 = vrot.lane.b32.xlu0 %v2732_v20, %s2435_s8 }
 0x166   : > { %1892 = vmatmul.mubr.msk.bf16.vlgmr.msra.gmra.mxu0 %vm743_vm3, %v2732_v20 }
 0x167   : > { %1903 = vmatprep.mubr.msk.bf16.mxu0 %vm2434_vm0, %v2433_v0 }
 0x168   : > { %675 = vrot.lane.b32.xlu0 %v669_v9, %s2436_s14 }
 0x1d2   : > { %v858_v21 = vpop.permute.xlu0 %857 }
 0x1d3   : > { %v863_v22 = vsel %vm743_vm3, %v858_v21, 0 }
 0x1d4   : > { %1902 = vmatpush3.bf16.xpose.msra.mxu0 %v863_v22 }
 0x1d5   : > { %1913 = vmatprep.subr.bf16.mxu0 %v2433_v0 }
 0x1d6   : > { %v853_v23 = vpop.permute.xlu0 %852 }
 0x1da   : > { %v676_v24 = vpop.permute.xlu0 %675 }
 0x1db   : > { %678 = vst.msk [vmem:[#allocation3] sm:$0xf] %vm670_vm2, %v676_v24  ;;  %1904 = vmatmul.mubr.msk.bf16.vlgmr.msra.gmra.mxu0 %vm743_vm3, %v853_v23 }
 0x1dc   : > { %1915 = vmatprep.mubr.msk.bf16.mxu0 %vm2434_vm0, %v2433_v0  ;;  %1914 = vmatpush3.bf16.msra.mxu0 %v974_v55 }
 0x1dd   : > { %1925 = vmatprep.subr.bf16.mxu0 %v2433_v0 }
 0x1e2   : > { %v742_v25 = vld [vmem:[#allocation3] sm:$0xf] }
 0x1e3   : > { %v807_v26 = vsel %vm805_vm4, %v742_v25, 0  ;;  %v2752_v42 = vcombine.low %v742_v25, %v742_v25 }
 0x1e4   : > { %1896 = vmatpush3.bf16.msra.mxu1 %v807_v26 }
 0x1e5   : > { %1907 = vmatprep.subr.bf16.mxu1 %v2433_v0 }
 0x226   : > { %v784_v27 = vpop.f32.mrf.mxu0 }
 0x227   : > { %v790_v28 = vsel %vm743_vm3, %v784_v27, -inf }
 0x228   : > { %791 = vmax.xlane.f32.xlu1 %v790_v28  ;;  %v1893_v29 = vpop.f32.mrf.mxu0 }
 0x22a   : > { %v787_v30 = vpop.f32.mrf.mxu0 }
 0x22c   : > { %v1894_v31 = vpop.f32.mrf.mxu0 }
 0x29b   : > { %v899_v32 = vpop.f32.mrf.mxu0 }
 0x29c   : > { %v905_v33 = vsel %vm743_vm3, %v899_v32, -inf }
 0x29d   : > { %906 = vmax.xlane.f32.xlu1 %v905_v33  ;;  %v1905_v34 = vpop.f32.mrf.mxu0 }
 0x29f   : > { %v902_v35 = vpop.f32.mrf.mxu0 }
 0x2a1   : > { %v1906_v36 = vpop.f32.mrf.mxu0 }
 0x2b1   : > { %v792_v37 = vpop.xlane.xlu1 %791 }
 0x2b2   : > { %v793_v38 = vsub.f32 %v784_v27, %v792_v37 }
 0x2b4   : > { %v794_v39 = vmul.f32 1.442695, %v793_v38 }
 0x2b6   : > { %2124 = vpow2.f32 %v794_v39 }
 0x2c3   : > { %v2125_v40 = vpop.eup %2124 }
 0x2c4   : > { %v796_v41 = vsel %vm743_vm3, %v2125_v40, 0.0 }
 0x2c5   : > { %797 = vadd.xlane.f32.xlu1 %v796_v41 }
 0x2d6   : > { %920 = vrot.lane.b32.xlu1 %v2752_v42, %s2435_s8  ;;  %s2952_s8 = sld [smem:[#allocation32_spill]] }
 0x2da   : > { %1064 = vrot.lane.b32.xlu1 %v2728_v19, %s2437_s22 }
 0x2dc   : > { %s1619_s14 = scalar_lea.hbm %s2952_s8, %s1831_s28 }
 0x2de   : > { %1062 = vrot.lane.b32.xlu1 %v2732_v20, %s2437_s22 }
 0x326   : > { %v907_v43 = vpop.xlane.xlu1 %906 }
 0x327   : > { %v908_v44 = vsub.f32 %v899_v32, %v907_v43 }
 0x329   : > { %v909_v45 = vmul.f32 1.442695, %v908_v44 }
 0x32b   : > { %2126 = vpow2.f32 %v909_v45 }
 0x338   : > { %v2127_v46 = vpop.eup %2126 }
 0x339   : > { %v911_v47 = vsel %vm743_vm3, %v2127_v46, 0.0 }
 0x33a   : > { %912 = vadd.xlane.f32.xlu0 %v911_v47 }
 0x34e   : > { %v798_v48 = vpop.xlane.xlu1 %797 }
 0x34f   : > { %2128 = vrcp.f32 %v798_v48 }
 0x350   : > { %1124 = vrot.lane.b32.xlu0 %v2752_v42, %s2437_s22  ;;  %s1607_s22 = scalar_lea.sflag [#allocation6], %s2669_s5 }
 0x352   : > { %v921_v51 = vpop.permute.xlu1 %920 }
 0x353   : > { %v926_v53 = vsel %vm805_vm4, %v921_v51, 0 }
 0x356   : > { %v1065_v7 = vpop.permute.xlu1 %1064 }
 0x357   : > { %v1070_v11 = vsel %vm743_vm3, %v1065_v7, 0 }
 0x35a   : > { %v1063_v14 = vpop.permute.xlu1 %1062 }
 0x35c   : > { %v2129_v49 = vpop.eup %2128 }
 0x35d   : > { %v800_v50 = vmul.f32 %v2129_v49, %v2125_v40 }
 0x35f   : > { %v801_v52 = vpack.c.bf16 %v800_v50, %v800_v50 }
 0x361   : > { %1898 = vmatmul.mubr.msk.bf16.vlgmr.msra.gmra.mxu1 %vm743_vm3, %v801_v52 }
 0x362   : > { %1908 = vmatpush3.bf16.msra.mxu1 %v926_v53  ;;  %1909 = vmatprep.mubr.msk.bf16.mxu1 %vm2434_vm0, %v2433_v0 }
 0x363   : > { %1919 = vmatprep.subr.bf16.mxu1 %v2433_v0 }
 0x3c3   : > { %v913_v56 = vpop.xlane.xlu0 %912 }
 0x3c4   : > { %2130 = vrcp.f32 %v913_v56 }
 0x3c7   : > { %v1125_v62 = vpop.permute.xlu0 %1124 }
 0x3c8   : > { %v1130_v3 = vsel %vm805_vm4, %v1125_v62, 0  ;;  %v1332_v62 = vld [vmem:[#allocation7 + $0xc] sm:$0xf] }
 0x3d1   : > { %v2131_v57 = vpop.eup %2130 }
 0x3d2   : > { %v915_v59 = vmul.f32 %v2131_v57, %v2127_v46 }
 0x3d4   : > { %v916_v60 = vpack.c.bf16 %v915_v59, %v915_v59 }
 0x3d6   : > { %1910 = vmatmul.mubr.msk.bf16.vlgmr.msra.gmra.mxu1 %vm743_vm3, %v916_v60 }
 0x3d7   : > { %1920 = vmatpush3.bf16.msra.mxu1 %v1020_v61  ;;  %1921 = vmatprep.mubr.msk.bf16.mxu1 %vm2434_vm0, %v2433_v0 }
 0x3d8   : > { %1931 = vmatprep.subr.bf16.mxu1 %v2433_v0 }
 0x421   : > { %v843_v63 = vpop.f32.mrf.mxu1 }
 0x422   : > { %v849_v1 = vpack.c.bf16 %v843_v63, %v843_v63  ;;  %v1337_v63 = vsel %vm805_vm4, %v1332_v62, 0 }
 0x423   : > { %v1899_v2 = vpop.f32.mrf.mxu1 }
 0x424   : > { %1922 = vmatmul.mubr.msk.bf16.vlgmr.msra.gmra.mxu1 %vm743_vm3, %v849_v1 }
 0x425   : > { %1932 = vmatpush3.bf16.msra.mxu1 %v1130_v3  ;;  %v846_v4 = vpop.f32.mrf.mxu1  ;;  %1933 = vmatprep.mubr.msk.bf16.mxu1 %vm2434_vm0, %v2433_v0 }
 0x426   : > { %1943 = vmatprep.subr.bf16.mxu1 %v2433_v0 }
 0x427   : > { %v1900_v5 = vpop.f32.mrf.mxu1 }
 0x496   : > { %v962_v8 = vpop.f32.mrf.mxu1 }
 0x497   : > { %v968_v9 = vpack.c.bf16 %v962_v8, %v962_v8 }
 0x498   : > { %v1911_v10 = vpop.f32.mrf.mxu1 }
 0x499   : > { %1916 = vmatmul.mubr.msk.bf16.vlgmr.msra.gmra.mxu0 %vm743_vm3, %v968_v9 }
 0x49a   : > { %1926 = vmatpush3.bf16.xpose.msra.mxu0 %v1070_v11  ;;  %v965_v12 = vpop.f32.mrf.mxu1  ;;  %1927 = vmatprep.mubr.msk.bf16.mxu0 %vm2434_vm0, %v2433_v0 }
 0x49b   : > { %1937 = vmatprep.subr.bf16.mxu0 %v2433_v0 }
 0x49c   : > { %v1912_v13 = vpop.f32.mrf.mxu1 }
 0x4a1   : > { %1928 = vmatmul.mubr.msk.bf16.vlgmr.msra.gmra.mxu0 %vm743_vm3, %v1063_v14 }
 0x4a2   : > { %1939 = vmatprep.mubr.msk.bf16.mxu0 %vm2434_vm0, %v2433_v0 }
 0x4e4   : > { %v2785_v15 = vpop.f32.mrf.mxu1 }
 0x4e6   : > { %v1923_v16 = vpop.f32.mrf.mxu1 }
 0x4e8   : > { %v1059_v17 = vpop.f32.mrf.mxu1 }
 0x4ea   : > { %v1924_v18 = vpop.f32.mrf.mxu1 }
 0x559   : > { %v2787_v21 = vpop.f32.mrf.mxu0 }
 0x55a   : > { %v1057_v60 = vadd.f32 %v2785_v15, %v2787_v21  ;;  %v1815_v15 = vld [vmem:[#allocation9] ss:$0 sm:$0xff] }
 0x55b   : > { %v1917_v22 = vpop.f32.mrf.mxu0 }
 0x55d   : > { %v1013_v23 = vpop.f32.mrf.mxu0 }
 0x55f   : > { %v1918_v24 = vpop.f32.mrf.mxu0 }
 0x561   : > { %v1106_v25 = vpop.f32.mrf.mxu0 }
 0x562   : > { %v1112_v26 = vsel %vm743_vm3, %v1106_v25, -inf }
 0x563   : > { %1113 = vmax.xlane.f32.xlu1 %v1112_v26  ;;  %v1929_v27 = vpop.f32.mrf.mxu0 }
 0x565   : > { %v1109_v28 = vpop.f32.mrf.mxu0 }
 0x567   : > { %v1930_v29 = vpop.f32.mrf.mxu0 }
 0x5ec   : > { %v1114_v30 = vpop.xlane.xlu1 %1113 }
 0x5ed   : > { %v1115_v31 = vsub.f32 %v1106_v25, %v1114_v30  ;;  %v2118_v30 = vld [vmem:[%s2948_s9 + $0x8] sm:$0xff]  }
 0x5ef   : > { %v1116_v32 = vmul.f32 1.442695, %v1115_v31 }
 0x5f1   : > { %2132 = vpow2.f32 %v1116_v32 }
 0x5fe   : > { %v2133_v33 = vpop.eup %2132 }
 0x5ff   : > { %v1118_v34 = vsel %vm743_vm3, %v2133_v33, 0.0 }
 0x600   : > { %1119 = vadd.xlane.f32.xlu0 %v1118_v34 }
 0x616   : > { %1223 = vrot.lane.b32.xlu0 %v2728_v19, %s2438_s4 }
 0x61a   : > { %1221 = vrot.lane.b32.xlu0 %v2732_v20, %s2438_s4  ;;  %v1173_v20 = vld [vmem:[#allocation7 + $0x8] sm:$0xf] }
 0x61b   : > { %v1178_v41 = vsel %vm805_vm4, %v1173_v20, 0  ;;  %v2121_v20 = vld [vmem:[%s2949_s11 + $0x10] sm:$0xff]  }
 0x61c   : > { %1938 = vmatpush3.bf16.msra.mxu0 %v1178_v41  ;;  %v2122_v41 = vld [vmem:[%s2949_s11 + $0x8] sm:$0xff]  }
 0x61d   : > { %1949 = vmatprep.subr.bf16.mxu0 %v2433_v0 }
 0x689   : > { %v1120_v35 = vpop.xlane.xlu0 %1119 }
 0x68a   : > { %2134 = vrcp.f32 %v1120_v35  ;;  %v1816_v35 = vld [vmem:[#allocation10] ss:$0 sm:$0xff] }
 0x68d   : > { %v1224_v38 = vpop.permute.xlu0 %1223 }
 0x68e   : > { %v1229_v40 = vsel %vm743_vm3, %v1224_v38, 0 }
 0x691   : > { %v1222_v19 = vpop.permute.xlu0 %1221 }
 0x697   : > { %v2135_v36 = vpop.eup %2134 }
 0x698   : > { %v1122_v37 = vmul.f32 %v2135_v36, %v2133_v33 }
 0x69a   : > { %v1123_v39 = vpack.c.bf16 %v1122_v37, %v1122_v37  ;;  %v1817_v37 = vld [vmem:[#allocation12] ss:$0 sm:$0xff] }
 0x69c   : > { %1934 = vmatmul.mubr.msk.bf16.vlgmr.msra.gmra.mxu1 %vm743_vm3, %v1123_v39 }
 0x69d   : > { %1944 = vmatpush3.bf16.xpose.msra.mxu1 %v1229_v40  ;;  %1945 = vmatprep.mubr.msk.bf16.mxu1 %vm2434_vm0, %v2433_v0 }
 0x69e   : > { %1955 = vmatprep.subr.bf16.mxu1 %v2433_v0 }
 0x6a4   : > { %1946 = vmatmul.mubr.msk.bf16.vlgmr.msra.gmra.mxu1 %vm743_vm3, %v1222_v19  ;;  %v2120_v19 = vld [vmem:[%s2949_s11 + $0x18] sm:$0xff]  }
 0x6a5   : > { %1957 = vmatprep.mubr.msk.bf16.mxu1 %vm2434_vm0, %v2433_v0  ;;  %1956 = vmatpush3.bf16.msra.mxu1 %v1337_v63 }
 0x6a6   : > { %1969 = vmatprep.subr.bf16.mxu1 %v2433_v0 }
 0x75c   : > { %v1166_v43 = vpop.f32.mrf.mxu1 }
 0x75d   : > { %v1172_v44 = vpack.c.bf16 %v1166_v43, %v1166_v43  ;;  %v2123_v43 = vld [vmem:[%s2949_s11] sm:$0xff]  }
 0x75e   : > { %v1935_v45 = vpop.f32.mrf.mxu1 }
 0x75f   : > { %1940 = vmatmul.mubr.msk.bf16.vlgmr.msra.gmra.mxu0 %vm743_vm3, %v1172_v44  ;;  %v1818_v44 = vld [vmem:[%s2950_s6] ss:$0 sm:$0xff]  ;;  %s2439_s6 = smov [#allocation16]  }
 0x760   : > { %v1169_v46 = vpop.f32.mrf.mxu1  ;;  %1951 = vmatprep.mubr.msk.bf16.mxu0 %vm2434_vm0, %v2433_v0  ;;  %s2334_s7 = sshll.u32 %s2439_s6, 4  ;;  %s2335_s7 = int_to_ptr.vmem [resolvable:$false] %s2334_s7 }
 0x761   : > { %s2336_s16 = scalar_lea.vmem %s2335_s7, 256  ;;  %p2337_p5 = scmp.lt.s32.totalorder %s1622_s19, %s2335_s7 }
 0x762   : > { %v1936_v47 = vpop.f32.mrf.mxu1 }
 0x764   : > { %v1265_v48 = vpop.f32.mrf.mxu1 }
 0x765   : > { %v1271_v49 = vsel %vm743_vm3, %v1265_v48, -inf }
 0x766   : > { %1272 = vmax.xlane.f32.xlu1 %v1271_v49  ;;  %v1947_v50 = vpop.f32.mrf.mxu1 }
 0x768   : > { %v1268_v51 = vpop.f32.mrf.mxu1 }
 0x76a   : > { %v1948_v52 = vpop.f32.mrf.mxu1 }
 0x777   : > { %1283 = vrot.lane.b32.xlu1 %v2752_v42, %s2438_s4  ;;  %s2330_s4 = scalar_lea.vmem %s1622_s19, 128 }
 0x778   : > { %p2331_p1 = scmp.ne.s32.totalorder %s1622_s19, %s2330_s4  ;;  %p2338_p8 = scmp.lt.s32.totalorder %s2336_s16, %s2330_s4 }
 0x77a   : > { %p2332_p4 = pnand %p2331_p1, %p2639_p12  ;;  %p2339_p3 = por %p2338_p8, %p2337_p5 }
 0x77c   : > { %p2333_p7 = pneg %p2332_p4 }
 0x77e   : > { %p2340_p6 = pnand %p2339_p3, %p2333_p7 }
 0x7ef   : > { %v1273_v53 = vpop.xlane.xlu1 %1272 }
 0x7f0   : > { %v1274_v54 = vsub.f32 %v1265_v48, %v1273_v53 }
 0x7f2   : > { %v1275_v55 = vmul.f32 1.442695, %v1274_v54 }
 0x7f3   : > { %v1284_v56 = vpop.permute.xlu1 %1283 }
 0x7f4   : > { %2136 = vpow2.f32 %v1275_v55  ;;  %v1289_v57 = vsel %vm805_vm4, %v1284_v56, 0  ;;  %v1822_v55 = vld [vmem:[%s2951_s21] ss:$0 sm:$0xff] }
 0x7f5   : > { %1950 = vmatpush3.bf16.msra.mxu0 %v1289_v57 }
 0x7f6   : > { %1961 = vmatprep.subr.bf16.mxu0 %v2433_v0 }
 0x801   : > { %v2137_v58 = vpop.eup %2136 }
 0x802   : > { %v1277_v59 = vsel %vm743_vm3, %v2137_v58, 0.0 }
 0x803   : > { %1278 = vadd.xlane.f32.xlu0 %v1277_v59 }
 0x81f   : > { %v1214_v61 = vpop.f32.mrf.mxu0 }
 0x820   : > { %v1220_v42 = vadd.f32 %v1214_v61, %v1057_v60 }
 0x821   : > { %v1941_v1 = vpop.f32.mrf.mxu0 }
 0x823   : > { %v1217_v2 = vpop.f32.mrf.mxu0 }
 0x825   : > { %v1942_v3 = vpop.f32.mrf.mxu0 }
 0x88c   : > { %v1279_v4 = vpop.xlane.xlu0 %1278 }
 0x88d   : > { %2138 = vrcp.f32 %v1279_v4 }
 0x89a   : > { %v2139_v5 = vpop.eup %2138 }
 0x89b   : > { %v1281_v7 = vmul.f32 %v2139_v5, %v2137_v58 }
 0x89d   : > { %v1282_v8 = vpack.c.bf16 %v1281_v7, %v1281_v7 }
 0x89f   : > { %1952 = vmatmul.mubr.msk.bf16.vlgmr.msra.gmra.mxu0 %vm743_vm3, %v1282_v8 }
 0x8a0   : > { %1965 = vmatprep.mubr.msk.bf16.mxu0 %vm2434_vm0, %v2433_v0  ;;  %1962 = vmatpush3.bf16.msra.mxu0 %v2118_v30 }
 0x8a1   : > { %1963 = vmatprep.subr.bf16.mxu0 %v2433_v0 }
 0x95f   : > { %v1325_v9 = vpop.f32.mrf.mxu0 }
 0x960   : > { %v1331_v10 = vpack.c.bf16 %v1325_v9, %v1325_v9  ;;  %v1828_v9 = vld [vmem:[#allocation13] ss:$0 sm:$0xff] }
 0x961   : > { %v1953_v11 = vpop.f32.mrf.mxu0 }
 0x962   : > { %1958 = vmatmul.mubr.msk.bf16.vlgmr.msra.gmra.mxu1 %vm743_vm3, %v1331_v10  ;;  %v1829_v11 = vld [vmem:[#allocation15] ss:$0 sm:$0xff] }
 0x963   : > { %v1328_v12 = vpop.f32.mrf.mxu0  ;;  %1977 = vmatprep.mubr.msk.bf16.mxu1 %vm2434_vm0, %v2433_v0  ;;  %1970 = vmatpush3.bf16.msra.mxu1 %v2120_v19 }
 0x964   : > { %1971 = vmatprep.subr.bf16.mxu1 %v2433_v0 }
 0x965   : > { %v1954_v13 = vpop.f32.mrf.mxu0 }
 0x967   : > { %1972 = vmatpush3.bf16.msra.mxu1 %v2121_v20 }
 0x968   : > { %1973 = vmatprep.subr.bf16.mxu1 %v2433_v0 }
 0x96b   : > { %1974 = vmatpush3.bf16.msra.mxu1 %v2122_v41 }
 0x96c   : > { %1975 = vmatprep.subr.bf16.mxu1 %v2433_v0 }
 0x96f   : > { %1976 = vmatpush3.bf16.msra.mxu1 %v2123_v43 }
 0xa22   : > { %v1373_v14 = vpop.f32.mrf.mxu1 }
 0xa23   : > { %v1379_v16 = vadd.f32 %v1373_v14, %v1220_v42 }
 0xa24   : > { %v1959_v17 = vpop.f32.mrf.mxu1 }
 0xa25   : > { %v1387_v18 = vadd.f32 %v1815_v15, %v1379_v16 }
 0xa26   : > { %v1376_v21 = vpop.f32.mrf.mxu1 }
 0xa27   : > { %v1388_v22 = vadd.f32 %v1387_v18, %v2713_v6  ;;  %v2119_v6 = vld [vmem:[%s2948_s9] sm:$0xff]  }
 0xa28   : > { %v1960_v23 = vpop.f32.mrf.mxu1  ;;  %1964 = vmatpush3.bf16.msra.mxu0 %v2119_v6 }
 0xa29   : > { %v1391_v24 = vsel %vm625_vm1, %v1388_v22, 0.0 }
 0xa2a   : > { %1392 = vadd.xlane.f32.xlu1 %v1391_v24 }
 0xab3   : > { %v1393_v25 = vpop.xlane.xlu1 %1392 }
 0xab4   : > { %v1395_v26 = vmul.f32 0.03125, %v1393_v25 }
 0xab6   : > { %v1396_v27 = vsub.f32 %v1388_v22, %v1395_v26 }
 0xab8   : > { %v1397_v28 = vmul.f32 %v1396_v27, %v1396_v27 }
 0xaba   : > { %v1398_v29 = vsel %vm625_vm1, %v1397_v28, 0.0 }
 0xabb   : > { %1399 = vadd.xlane.f32.xlu0 %v1398_v29 }
 0xb44   : > { %v1400_v31 = vpop.xlane.xlu0 %1399 }
 0xb45   : > { %v1401_v32 = vmul.f32 0.03125, %v1400_v31 }
 0xb47   : > { %v1402_v33 = vadd.f32 1e-05, %v1401_v32 }
 0xb49   : > { %2140 = vrsqrt.f32 %v1402_v33 }
 0xb56   : > { %v2141_v34 = vpop.eup %2140 }
 0xb57   : > { %v1404_v36 = vmul.f32 %v2141_v34, %v1396_v27 }
 0xb59   : > { %v1411_v38 = vmul.f32 %v1816_v35, %v1404_v36 }
 0xb5b   : > { %v1418_v39 = vadd.f32 %v1817_v37, %v1411_v38 }
 0xb5d   : > { %v1419_v40 = vpack.c.bf16 %v1418_v39, %v1418_v39 }
 0xb5f   : > { %1966 = vmatmul.mubr.msk.bf16.vlgmr.msra.gmra.mxu0 %vm625_vm1, %v1419_v40 }
 0xc1f   : > { %v1480_v45 = vpop.f32.mrf.mxu0 }
 0xc20   : > { %v1481_v46 = vadd.f32 %v1818_v44, %v1480_v45 }
 0xc21   : > { %v1967_v47 = vpop.f32.mrf.mxu0 }
 0xc22   : > { %v1487_v48 = vmul.f32 0.70710677, %v1481_v46  ;;  %v1486_v52 = vmul.f32 0.5, %v1481_v46 }
 0xc23   : > { %v1483_v49 = vpop.f32.mrf.mxu0 }
 0xc24   : > { %2142 = verf.f32 %v1487_v48 }
 0xc25   : > { %v1968_v50 = vpop.f32.mrf.mxu0 }
 0xc31   : > { %v2143_v51 = vpop.eup %2142 }
 0xc32   : > { %v1489_v53 = vadd.f32 1.0, %v2143_v51 }
 0xc34   : > { %v1490_v0 = vmul.f32 %v1489_v53, %v1486_v52 }
 0xc36   : > { %v1491_v54 = vpack.c.bf16 %v1490_v0, %v1490_v0 }
 0xc38   : > { %1978 = vmatmul.mubr.msk.bf16.vlgmr.msra.gmra.mxu1 %vm1531_vm5, %v1491_v54 }
 0xcf8   : > { %v1569_v56 = vpop.f32.mrf.mxu1 }
 0xcf9   : > { %v1570_v57 = vadd.f32 %v1822_v55, %v1569_v56 }
 0xcfa   : > { %v1979_v58 = vpop.f32.mrf.mxu1 }
 0xcfb   : > { %v1575_v59 = vadd.f32 %v1570_v57, %v1418_v39 }
 0xcfc   : > { %v1572_v60 = vpop.f32.mrf.mxu1 }
 0xcfd   : > { %v1578_v61 = vsel %vm625_vm1, %v1575_v59, 0.0 }
 0xcfe   : > { %1579 = vadd.xlane.f32.xlu0 %v1578_v61  ;;  %v1980_v62 = vpop.f32.mrf.mxu1 }
 0xd87   : > { %v1580_v42 = vpop.xlane.xlu0 %1579 }
 0xd88   : > { %v1581_v63 = vmul.f32 0.03125, %v1580_v42 }
 0xd8a   : > { %v1582_v1 = vsub.f32 %v1575_v59, %v1581_v63 }
 0xd8c   : > { %v1583_v2 = vmul.f32 %v1582_v1, %v1582_v1 }
 0xd8e   : > { %v1584_v3 = vsel %vm625_vm1, %v1583_v2, 0.0 }
 0xd8f   : > { %1585 = vadd.xlane.f32.xlu0 %v1584_v3 }
 0xe18   : > { %v1586_v4 = vpop.xlane.xlu0 %1585 }
 0xe19   : > { %v1587_v5 = vmul.f32 0.03125, %v1586_v4 }
 0xe1b   : > { %v1588_v7 = vadd.f32 1e-05, %v1587_v5 }
 0xe1d   : > { %2144 = vrsqrt.f32 %v1588_v7 }
 0xe2a   : > { %v2145_v8 = vpop.eup %2144 }
 0xe2b   : > { %v1590_v10 = vmul.f32 %v2145_v8, %v1582_v1 }
 0xe2d   : > { %v1597_v12 = vmul.f32 %v1828_v9, %v1590_v10 }
 0xe2f   : > { %v1604_v13 = vadd.f32 %v1829_v11, %v1597_v12 }
 0xe31   : > { %1605 = vst.msk [vmem:[%s594_s12] sm:$0xff] %vm625_vm1, %v1604_v13 }
 0xe32   : > { %2343 = shalt.err (!%p2340_p6)
}
 0xe33   : > { %s2344_s20 = scalar_lea.hbm %s1619_s14, 128  ;;  %s2348_s10 = scalar_lea.hbm %s2952_s8, 256 }
 0xe34   : > { %p2345_p11 = scmp.ne.s32.totalorder %s1619_s14, %s2344_s20  ;;  %p2349_p2 = scmp.lt.s32.totalorder %s1619_s14, %s2952_s8 }
 0xe35   : > { %p2350_p10 = scmp.lt.s32.totalorder %s2348_s10, %s2344_s20 }
 0xe36   : > { %p2346_p13 = pnand %p2345_p11, %p2639_p12 }
 0xe37   : > { %p2351_p1 = por %p2350_p10, %p2349_p2 }
 0xe38   : > { %p2347_p9 = pneg %p2346_p13 }
 0xe3a   : > { %p2352_p4 = pnand %p2351_p1, %p2347_p9 }
 0xe3c   : > { %2355 = shalt.err (!%p2352_p4)
}
 0xe3d   : > { %2007 = dma.vmem_to_hbm [thread:$0]  (%p2639_p12), %s1622_s19, 128, %s1619_s14, %s1607_s22  }
 0xe3e PF: > { %s1633_s24 = sand.u32 1, %s2402_s29   ;;  %p2953_p7 = scmp.ge.s32.totalorder %s2422_s18, 2 }
 0xe3f   : > { %s1634_s13 = scalar_lea.sflag [#allocation6], %s1633_s24 }
 0xe40   : > { %p2033_p5 = pnand %p2953_p7, %p2646_p0 }
 0xe42   : > { %p2034_p8 = pneg %p2033_p5 }
 0xe44   : > { %2397 = dma.done.wait (%p2034_p8), %s1634_s13, 128  }
 0xe45   : > { %2399 = vsyncadd (%p2034_p8), %s1634_s13, 4294967168  ;;  %s33_s18 = sadd.s32 1, %s2422_s18   ;;  %s2954_s29 = smov %s2406_s30 }
 0xe46   : > { %p30_p3 = scmp.ge.s32.totalorder %s33_s18, 4   ;;  %s2955_s30 = smov %s2410_s15 }
 0xe47   : > { %s2956_s15 = smov %s2644_s26  ;;  %s2957_s16 = smov %s2418_s17 }
 0xe48   : > { %s2958_s17 = smov %s2960_s25  ;;  %32 = sbr.rel (!%p30_p3) target bundleno = 21 (0x15), region = 152 }
 0xe4d   :  { %1639 = vsyncpa [#allocation5], 1 }
 0xe4e   :  { %1641 = vsyncpa [#allocation5 + $0x1], 1 }
 0xe4f   :  { %1642 = vsyncpa [#allocation8], 1 }
 0xe50   :  { %1643 = vsyncpa [#allocation11], 1 }
 0xe51   :  { %1644 = vsyncpa [#allocation14], 1 }
 0xe52   :  { %1645 = vsyncpa [#allocation6], 1 }
 0xe53   :  { %1647 = vsyncpa [#allocation6 + $0x1], 1 }

</bundles_post_ra>
